<compile_context>
chip_gen: v7x
topology: tpu7x:2x2x1
jax: 0.10.0
libtpu: 0.0.40
codegen_flags: <defaults>
</compile_context>

<pallas_src>
import jax
import jax.numpy as jnp
from jax.experimental import pallas as pl
from jax.experimental.pallas import tpu as pltpu

# logical sizes (from the PyTorch module)
IN_DIM = 10000
H1 = 100
H2 = 10
OUT = 2

# padded sizes for TPU-friendly layouts
K_PAD = 10112            # 79 * 128, next multiple of 128 >= 10000
H1_PAD = 128
SUBLANE = 8
MAX_RESIDENT_ROWS = 256  # keeps x slab + weights well under v5e's 16 MiB scoped VMEM


def mlp_kernel(x_ref, w1_ref, w23b_ref, o_ref):
    """3-layer MLP, fully resident in VMEM, single grid step.

    x_ref    : (B_pad, K_PAD)  bf16  one flattened sample per row
    w1_ref   : (K_PAD, 128)    bf16  linear1 weight, transposed + zero-padded
    w23b_ref : (128, 384)      bf16  [ W2^T | W3^T | bias rows ]
    o_ref    : (B_pad, 128)    f32   row r, lanes 0:2 = logits of sample r
    """
    w23b = w23b_ref[...]
    w2 = w23b[:, :H1_PAD]                              # (128, 128) bf16
    w3 = w23b[:, H1_PAD:2 * H1_PAD]                    # (128, 128) bf16
    b = w23b[:, 2 * H1_PAD:].astype(jnp.float32)       # rows 0,1,2 = b1,b2,b3

    # layer 1: bf16 MXU matmul, f32 accumulation, bias + ReLU
    h1 = jnp.dot(x_ref[...], w1_ref[...], preferred_element_type=jnp.float32)
    h1 = jnp.maximum(h1 + b[0:1, :], 0.0).astype(jnp.bfloat16)

    # layer 2: (B,128) @ (128,128) bf16 -> f32
    h2 = jnp.dot(h1, w2, preferred_element_type=jnp.float32)
    h2 = jnp.maximum(h2 + b[1:2, :], 0.0).astype(jnp.bfloat16)

    # layer 3: (B,128) @ (128,128) bf16 -> f32
    o = jnp.dot(h2, w3, preferred_element_type=jnp.float32)
    o_ref[...] = o + b[2:3, :]


def _pad2d(a, rows, cols):
    out = jnp.zeros((rows, cols), jnp.float32)
    return out.at[: a.shape[0], : a.shape[1]].set(a.astype(jnp.float32))


def init_params(key):
    """Deterministic init mimicking nn.Linear default (U[-1/sqrt(fan_in), +])."""
    ks = jax.random.split(key, 6)

    def lin(kw, kb, fan_in, fan_out):
        bound = 1.0 / jnp.sqrt(fan_in)
        w = jax.random.uniform(kw, (fan_out, fan_in), jnp.float32, -bound, bound)
        b = jax.random.uniform(kb, (fan_out,), jnp.float32, -bound, bound)
        return w, b

    w1, b1 = lin(ks[0], ks[1], IN_DIM, H1)
    w2, b2 = lin(ks[2], ks[3], H1, H2)
    w3, b3 = lin(ks[4], ks[5], H2, OUT)
    return (w1, b1, w2, b2, w3, b3)


def prepare_params(params):
    """One-time: transpose + pad + pack weights into TPU-friendly bf16 slabs."""
    w1, b1, w2, b2, w3, b3 = params

    w1_p = _pad2d(w1.T, K_PAD, H1_PAD).astype(jnp.bfloat16)          # (10112, 128)

    w2_p = _pad2d(w2.T, H1_PAD, H1_PAD)                               # (128, 128)
    w3_p = _pad2d(w3.T, H1_PAD, H1_PAD)                               # (128, 128)
    bias_p = jnp.zeros((H1_PAD, H1_PAD), jnp.float32)
    bias_p = bias_p.at[0, :H1].set(b1.astype(jnp.float32))
    bias_p = bias_p.at[1, :H2].set(b2.astype(jnp.float32))
    bias_p = bias_p.at[2, :OUT].set(b3.astype(jnp.float32))
    w23b_p = jnp.concatenate([w2_p, w3_p, bias_p], axis=1).astype(jnp.bfloat16)  # (128, 384)

    return jax.device_put(w1_p), jax.device_put(w23b_p)


@jax.jit
def _forward_impl(xb, w1_p, w23b_p):
    """xb: (B, IN_DIM) f32 — one flattened sample per row."""
    B = xb.shape[0]
    b_pad = ((B + SUBLANE - 1) // SUBLANE) * SUBLANE
    # Build the input slab directly in bf16 (no f32 intermediate).
    x_p = jnp.pad(xb.astype(jnp.bfloat16), ((0, b_pad - B), (0, K_PAD - IN_DIM)))

    vmem = pl.BlockSpec(memory_space=pltpu.MemorySpace.VMEM)
    out = pl.pallas_call(
        mlp_kernel,
        out_shape=jax.ShapeDtypeStruct((b_pad, H1_PAD), jnp.float32),
        in_specs=[vmem, vmem, vmem],
        out_specs=vmem,
    )(x_p, w1_p, w23b_p)
    return out[:B, :OUT]


def logistic_regression_forward(x, w1_p, w23b_p):
    """Single-sample forward, identical semantics to LogisticRegression.forward."""
    return _forward_impl(jnp.reshape(x, (1, IN_DIM)), w1_p, w23b_p)[0]


def logistic_regression_forward_batch(xs, w1_p, w23b_p):
    """Batched forward: applies the module independently to each leading-dim sample."""
    B = xs.shape[0]
    if B > MAX_RESIDENT_ROWS:
        # TODO(synk): tile the batch axis with a grid (W1 index_map fixed) for large B.
        raise ValueError(f"batch {B} > {MAX_RESIDENT_ROWS}; add batch tiling first")
    return _forward_impl(jnp.reshape(xs, (B, IN_DIM)), w1_p, w23b_p)


if __name__ == "__main__":
    key = jax.random.PRNGKey(0)
    k_param, k_x, k_xb = jax.random.split(key, 3)

    params = init_params(k_param)
    prepared = prepare_params(params)   # one-time, off the hot path

    w1, b1, w2, b2, w3, b3 = params
    HI = jax.lax.Precision.HIGHEST

    def ref_f32(xf):
        h = jnp.maximum(jnp.matmul(xf, w1.T, precision=HI) + b1, 0.0)
        h = jnp.maximum(jnp.matmul(h, w2.T, precision=HI) + b2, 0.0)
        return jnp.matmul(h, w3.T, precision=HI) + b3

    def q(a):
        return a.astype(jnp.bfloat16).astype(jnp.float32)

    def ref_quant(xf):
        # mirrors the kernel's bf16 storage of x / weights / biases / activations
        h = q(jnp.maximum(jnp.matmul(q(xf), q(w1).T, precision=HI) + q(b1), 0.0))
        h = q(jnp.maximum(jnp.matmul(h, q(w2).T, precision=HI) + q(b2), 0.0))
        return jnp.matmul(h, q(w3).T, precision=HI) + q(b3)

    # ---- single sample (module semantics: flatten(x, 0) -> (2,) logits) ----
    x = jax.random.normal(k_x, (100, 100), jnp.float32)
    y = jax.block_until_ready(logistic_regression_forward(x, *prepared))
    assert y.shape == (OUT,)

    xf = jnp.reshape(x, (-1,))
    yq = ref_quant(xf)
    yf = ref_f32(xf)
    assert jnp.allclose(y, yq, atol=2e-3, rtol=2e-3), (y, yq)
    assert jnp.allclose(y, yf, atol=5e-2, rtol=5e-2), (y, yf)

    # ---- batched: 16 samples in one pallas_call (amortizes the W1 DMA) ----
    xb = jax.random.normal(k_xb, (16, 100, 100), jnp.float32)
    yb = jax.block_until_ready(logistic_regression_forward_batch(xb, *prepared))
    assert yb.shape == (16, OUT)

    xbf = jnp.reshape(xb, (16, IN_DIM))
    ybq = ref_quant(xbf)
    ybf = ref_f32(xbf)
    assert jnp.allclose(yb, ybq, atol=2e-3, rtol=2e-3), (yb, ybq)
    assert jnp.allclose(yb, ybf, atol=5e-2, rtol=5e-2), (yb, ybf)

    print("KERNEL_OK")
</pallas_src>

<mosaic_0001>
module attributes {stable_mosaic.version = 11 : i64} {
  func.func @mlp_kernel(%arg0: memref<8x10112xbf16, #tpu.memory_space<vmem>>, %arg1: memref<10112x128xbf16, #tpu.memory_space<vmem>>, %arg2: memref<128x384xbf16, #tpu.memory_space<vmem>>, %arg3: memref<8x128xf32, #tpu.memory_space<vmem>>) attributes {dimension_semantics = [], scalar_prefetch = 0 : i64, scratch_operands = 0 : i64, tpu.core_type = #tpu.core_type<tc>} {
    %c0 = arith.constant 0 : index
    %c0_0 = arith.constant 0 : index
    %0 = vector.load %arg2[%c0, %c0_0] : memref<128x384xbf16, #tpu.memory_space<vmem>>, vector<128x384xbf16>
    %1 = vector.extract_strided_slice %0 {offsets = [0, 0], sizes = [128, 128], strides = [1, 1]} : vector<128x384xbf16> to vector<128x128xbf16>
    %2 = vector.extract_strided_slice %0 {offsets = [0, 128], sizes = [128, 128], strides = [1, 1]} : vector<128x384xbf16> to vector<128x128xbf16>
    %3 = vector.extract_strided_slice %0 {offsets = [0, 256], sizes = [128, 128], strides = [1, 1]} : vector<128x384xbf16> to vector<128x128xbf16>
    %4 = arith.extf %3 : vector<128x128xbf16> to vector<128x128xf32>
    %c0_1 = arith.constant 0 : index
    %c0_2 = arith.constant 0 : index
    %5 = vector.load %arg0[%c0_1, %c0_2] : memref<8x10112xbf16, #tpu.memory_space<vmem>>, vector<8x10112xbf16>
    %c0_3 = arith.constant 0 : index
    %c0_4 = arith.constant 0 : index
    %6 = vector.load %arg1[%c0_3, %c0_4] : memref<10112x128xbf16, #tpu.memory_space<vmem>>, vector<10112x128xbf16>
    %cst = arith.constant dense<0.000000e+00> : vector<8x128xf32>
    %7 = tpu.matmul %5, %6, %cst {dimension_numbers = #tpu.dot_dimension_numbers<[1], [0], [0], [1], [0, 0, 1, 1], [], []>} : vector<8x10112xbf16>, vector<10112x128xbf16>, vector<8x128xf32> -> vector<8x128xf32>
    %8 = vector.extract_strided_slice %4 {offsets = [0, 0], sizes = [1, 128], strides = [1, 1]} : vector<128x128xf32> to vector<1x128xf32>
    %9 = vector.broadcast %8 : vector<1x128xf32> to vector<8x128xf32>
    %10 = arith.addf %7, %9 : vector<8x128xf32>
    %cst_5 = arith.constant 0.000000e+00 : f32
    %11 = vector.broadcast %cst_5 : f32 to vector<8x128xf32>
    %12 = arith.maximumf %10, %11 : vector<8x128xf32>
    %13 = arith.truncf %12 : vector<8x128xf32> to vector<8x128xbf16>
    %cst_6 = arith.constant dense<0.000000e+00> : vector<8x128xf32>
    %14 = tpu.matmul %13, %1, %cst_6 {dimension_numbers = #tpu.dot_dimension_numbers<[1], [0], [0], [1], [0, 0, 1, 1], [], []>} : vector<8x128xbf16>, vector<128x128xbf16>, vector<8x128xf32> -> vector<8x128xf32>
    %15 = vector.extract_strided_slice %4 {offsets = [1, 0], sizes = [1, 128], strides = [1, 1]} : vector<128x128xf32> to vector<1x128xf32>
    %16 = vector.broadcast %15 : vector<1x128xf32> to vector<8x128xf32>
    %17 = arith.addf %14, %16 : vector<8x128xf32>
    %cst_7 = arith.constant 0.000000e+00 : f32
    %18 = vector.broadcast %cst_7 : f32 to vector<8x128xf32>
    %19 = arith.maximumf %17, %18 : vector<8x128xf32>
    %20 = arith.truncf %19 : vector<8x128xf32> to vector<8x128xbf16>
    %cst_8 = arith.constant dense<0.000000e+00> : vector<8x128xf32>
    %21 = tpu.matmul %20, %2, %cst_8 {dimension_numbers = #tpu.dot_dimension_numbers<[1], [0], [0], [1], [0, 0, 1, 1], [], []>} : vector<8x128xbf16>, vector<128x128xbf16>, vector<8x128xf32> -> vector<8x128xf32>
    %22 = vector.extract_strided_slice %4 {offsets = [2, 0], sizes = [1, 128], strides = [1, 1]} : vector<128x128xf32> to vector<1x128xf32>
    %23 = vector.broadcast %22 : vector<1x128xf32> to vector<8x128xf32>
    %24 = arith.addf %21, %23 : vector<8x128xf32>
    %c0_9 = arith.constant 0 : index
    %c0_10 = arith.constant 0 : index
    %25 = vector.load %arg3[%c0_9, %c0_10] : memref<8x128xf32, #tpu.memory_space<vmem>>, vector<8x128xf32>
    tpu.vector_store %arg3[%c0_9, %c0_10], %24 {strides = array<i32>} : memref<8x128xf32, #tpu.memory_space<vmem>>, vector<8x128xf32>,
    return
  }
}

</mosaic_0001>

<bundles_post_ra>
// kernel: _forward_impl.1
= control target key start
LH: loop header
LB: loop body
LE: loop exit
PB: predicated region body
PF: predicated region fallthrough
CT: control target
= control target key end

     0   :  { %8 = vsyncpa [#allocation3], 0  ;;  %s9931_s0 = inlined_call_operand.vmem [shape: bf16[8,10112], index: 0, kind: input, shape index: {}]   ;;  %s9932_s1 = inlined_call_operand.hbm [shape: bf16[10112,128], index: 1, kind: input, shape index: {}]   ;;  %s9933_s2 = inlined_call_operand.hbm [shape: bf16[128,384], index: 2, kind: input, shape index: {}]   ;;  %s9934_s3 = inlined_call_operand.vmem [shape: f32[8,128], index: 3, kind: output, shape index: {}]  }
   0x1   :  { %9 = vsyncpa [#allocation5], 0  ;;  %s9680_s12 = smov [#allocation2]   ;;  %s9632_s16 = scalar_lea.hbm %s9932_s1, 80896 }
   0x2   :  { %s17_s13 = sshll.u32 %s9680_s12, 4  ;;  %p9633_p0 = scmp.ne.s32.totalorder %s9932_s1, %s9632_s16  ;;  %s18_s13 = int_to_ptr.vmem [resolvable:$true] %s17_s13 }
   0x3   :  { %p9636_p1 = scmp.lt.u32.totalorder %s9632_s16, %s9932_s1 }
   0x5   :  { %p9638_p2 = pnand %p9636_p1, %p9633_p0 }
   0x7   :  { %9641 = shalt.err (!%p9638_p2)
}
   0x8   :  { %s9642_s21 = scalar_lea.vmem %s18_s13, 80896  ;;  %p9647_p4 = scmp.lt.s32.totalorder %s18_s13, %s18_s13 }
   0x9   :  { %p9643_p3 = scmp.ne.s32.totalorder %s18_s13, %s9642_s21  ;;  %p9648_p5 = scmp.lt.s32.totalorder %s9642_s21, %s9642_s21 }
   0xb   :  { %p9649_p6 = por %p9648_p5, %p9647_p4 }
   0xd   :  { %p9650_p7 = pnand %p9649_p6, %p9643_p3 }
   0xf   :  { %9653 = shalt.err (!%p9650_p7)
}
  0x10   :  { %s9681_s22 = smov 64   ;;  %s9682_s23 = smov 4  }
  0x11   :  { %23 = dma.hbm_to_vmem [thread:$0]  %s9932_s1, 80896, %s18_s13, [#allocation3], %s9681_s22, %s9681_s22, %s9682_s23  }
  0x12   :  { %s9683_s26 = smov [#allocation4]   ;;  %s9654_s30 = scalar_lea.hbm %s9933_s2, 3072 }
  0x13   :  { %s29_s27 = sshll.u32 %s9683_s26, 4  ;;  %p9655_p8 = scmp.ne.s32.totalorder %s9933_s2, %s9654_s30  ;;  %s30_s27 = int_to_ptr.vmem [resolvable:$true] %s29_s27 }
  0x14   :  { %p9658_p9 = scmp.lt.u32.totalorder %s9654_s30, %s9933_s2 }
  0x16   :  { %p9660_p10 = pnand %p9658_p9, %p9655_p8 }
  0x18   :  { %9663 = shalt.err (!%p9660_p10)
}
  0x19   :  { %s9664_s8 = scalar_lea.vmem %s30_s27, 3072  ;;  %p9669_p12 = scmp.lt.s32.totalorder %s30_s27, %s30_s27 }
  0x1a   :  { %p9665_p11 = scmp.ne.s32.totalorder %s30_s27, %s9664_s8  ;;  %p9670_p13 = scmp.lt.s32.totalorder %s9664_s8, %s9664_s8 }
  0x1c   :  { %p9671_p0 = por %p9670_p13, %p9669_p12 }
  0x1e   :  { %p9672_p1 = pnand %p9671_p0, %p9665_p11 }
  0x20   :  { %9675 = shalt.err (!%p9672_p1)
}
  0x21   :  { %s9684_s1 = smov 192   ;;  %s9685_s9 = smov 12  }
  0x22   :  { %35 = dma.hbm_to_vmem [thread:$0]  %s9933_s2, 3072, %s30_s27, [#allocation5], %s9684_s1, %s9684_s1, %s9685_s9  }
  0x23   :  { %9676 = dma.done.wait [#allocation3], 80896  }
  0x24   :  { %9677 = vsyncadd [#allocation3], 4294886400 }
  0x25   :  { %9678 = dma.done.wait [#allocation5], 3072  }
  0x26   :  { %9679 = vsyncadd [#allocation5], 4294964224  ;;  %v8897_v0 = vld [vmem:[#allocation2 + $0x40] sm:$0xff]   ;;  %v8901_v4 = vld [vmem:[#allocation2 + $0x48] sm:$0xff]   ;;  %vm9687_vm0 = vmmov 0  }
  0x27   :  { %v8898_v1 = vld [vmem:[#allocation2] sm:$0xff]   ;;  %7944 = vmatprep.subr.bf16.mxu0 %v8897_v0  ;;  %v8902_v5 = vld [vmem:[#allocation2 + $0x8] sm:$0xff]   ;;  %v8905_v8 = vld [vmem:[#allocation2 + $0x50] sm:$0xff]  }
  0x28   :  { %v8899_v2 = vld [vmem:[#allocation2 + $0xc0] sm:$0xff]   ;;  %7945 = vmatpush3.bf16.msra.mxu0 %v8898_v1  ;;  %v8903_v6 = vld [vmem:[#allocation2 + $0xc8] sm:$0xff]   ;;  %v8906_v9 = vld [vmem:[#allocation2 + $0x10] sm:$0xff]  }
  0x29   :  { %v8900_v3 = vld [vmem:[#allocation2 + $0x80] sm:$0xff]   ;;  %7966 = vmatprep.subr.bf16.mxu1 %v8899_v2  ;;  %7946 = vmatprep.subr.bf16.mxu0 %v8901_v4  ;;  %v8904_v7 = vld [vmem:[#allocation2 + $0x88] sm:$0xff]   ;;  %v8907_v10 = vld [vmem:[#allocation2 + $0xd0] sm:$0xff]  }
  0x2a   :  { %7967 = vmatpush3.bf16.msra.mxu1 %v8900_v3  ;;  %v8908_v11 = vld [vmem:[#allocation2 + $0x90] sm:$0xff]   ;;  %v8909_v12 = vld [vmem:[#allocation2 + $0x58] sm:$0xff]   ;;  %v8913_v16 = vld [vmem:[#allocation2 + $0x60] sm:$0xff]  }
  0x2b   :  { %7968 = vmatprep.subr.bf16.mxu1 %v8903_v6  ;;  %v8910_v13 = vld [vmem:[#allocation2 + $0x18] sm:$0xff]   ;;  %v8914_v17 = vld [vmem:[#allocation2 + $0x20] sm:$0xff]   ;;  %v8917_v20 = vld [vmem:[#allocation2 + $0x68] sm:$0xff]  }
  0x2c   :  { %7947 = vmatpush3.bf16.msra.mxu0 %v8902_v5  ;;  %v8911_v14 = vld [vmem:[#allocation2 + $0xd8] sm:$0xff]   ;;  %v8915_v18 = vld [vmem:[#allocation2 + $0xe0] sm:$0xff]   ;;  %v8918_v21 = vld [vmem:[#allocation2 + $0x28] sm:$0xff]  }
  0x2d   :  { %7948 = vmatprep.subr.bf16.mxu0 %v8905_v8  ;;  %v8912_v15 = vld [vmem:[#allocation2 + $0x98] sm:$0xff]   ;;  %v8916_v19 = vld [vmem:[#allocation2 + $0xa0] sm:$0xff]   ;;  %v8919_v22 = vld [vmem:[#allocation2 + $0xe8] sm:$0xff]  }
  0x2e   :  { %7969 = vmatpush3.bf16.msra.mxu1 %v8904_v7  ;;  %v8920_v23 = vld [vmem:[#allocation2 + $0xa8] sm:$0xff]   ;;  %v8921_v24 = vld [vmem:[#allocation2 + $0x70] sm:$0xff]   ;;  %v8925_v28 = vld [vmem:[#allocation2 + $0x78] sm:$0xff]  }
  0x2f   :  { %7970 = vmatprep.subr.bf16.mxu1 %v8907_v10  ;;  %v8922_v25 = vld [vmem:[#allocation2 + $0x30] sm:$0xff]   ;;  %v8926_v29 = vld [vmem:[#allocation2 + $0x38] sm:$0xff]   ;;  %v61_v31 = vld [vmem:[%s9931_s0] sm:$0xff] }
  0x30   :  { %7949 = vmatpush3.bf16.msra.mxu0 %v8906_v9  ;;  %v8923_v26 = vld [vmem:[#allocation2 + $0xf0] sm:$0xff]   ;;  %v8927_v30 = vld [vmem:[#allocation2 + $0xf8] sm:$0xff]   ;;  %v7217_v32 = vcombine.low %v61_v31, %v61_v31  ;;  %v7218_v33 = vcombine.high %v61_v31, %v61_v31  ;;  %v8931_v35 = vld [vmem:[#allocation2 + $0x140] sm:$0xff]  }
  0x31   :  { %7950 = vmatprep.subr.bf16.mxu0 %v8909_v12  ;;  %v8924_v27 = vld [vmem:[#allocation2 + $0xb0] sm:$0xff]   ;;  %v8930_v34 = vld [vmem:[#allocation2 + $0xb8] sm:$0xff]   ;;  %v62_v36 = vld [vmem:[%s9931_s0 + $0x8] sm:$0xff] }
  0x32   :  { %7971 = vmatpush3.bf16.msra.mxu1 %v8908_v11  ;;  %5470 = vmatprep.mubr.bf16.mxu0 %v7218_v33  ;;  %v7219_v37 = vcombine.low %v62_v36, %v62_v36  ;;  %v7220_v38 = vcombine.high %v62_v36, %v62_v36  ;;  %v8934_v39 = vld [vmem:[#allocation2 + $0x100] sm:$0xff]   ;;  %v8937_v42 = vld [vmem:[#allocation2 + $0x148] sm:$0xff]   ;;  %v8941_v46 = vld [vmem:[#allocation2 + $0x150] sm:$0xff]  }
  0x33   :  { %7972 = vmatprep.subr.bf16.mxu1 %v8911_v14  ;;  %v8935_v40 = vld [vmem:[#allocation2 + $0x1c0] sm:$0xff]   ;;  %v8938_v43 = vld [vmem:[#allocation2 + $0x108] sm:$0xff]   ;;  %v8942_v47 = vld [vmem:[#allocation2 + $0x110] sm:$0xff]  }
  0x34   :  { %7951 = vmatpush3.bf16.msra.mxu0 %v8910_v13  ;;  %5510 = vmatprep.mubr.bf16.mxu1 %v7220_v38  ;;  %v8936_v41 = vld [vmem:[#allocation2 + $0x180] sm:$0xff]   ;;  %v8939_v44 = vld [vmem:[#allocation2 + $0x1c8] sm:$0xff]   ;;  %v8943_v48 = vld [vmem:[#allocation2 + $0x1d0] sm:$0xff]  }
  0x35   :  { %7952 = vmatprep.subr.bf16.mxu0 %v8913_v16  ;;  %v8940_v45 = vld [vmem:[#allocation2 + $0x188] sm:$0xff]   ;;  %v8944_v49 = vld [vmem:[#allocation2 + $0x190] sm:$0xff]   ;;  %v8945_v50 = vld [vmem:[#allocation2 + $0x158] sm:$0xff]  }
  0x36   :  { %7973 = vmatpush3.bf16.msra.mxu1 %v8912_v15  ;;  %v8946_v51 = vld [vmem:[#allocation2 + $0x118] sm:$0xff]   ;;  %v8949_v54 = vld [vmem:[#allocation2 + $0x160] sm:$0xff]   ;;  %v8953_v58 = vld [vmem:[#allocation2 + $0x168] sm:$0xff]  }
  0x37   :  { %7974 = vmatprep.subr.bf16.mxu1 %v8915_v18  ;;  %v8947_v52 = vld [vmem:[#allocation2 + $0x1d8] sm:$0xff]   ;;  %v8950_v55 = vld [vmem:[#allocation2 + $0x120] sm:$0xff]   ;;  %v8954_v59 = vld [vmem:[#allocation2 + $0x128] sm:$0xff]  }
  0x38   :  { %7953 = vmatpush3.bf16.msra.mxu0 %v8914_v17  ;;  %v8948_v53 = vld [vmem:[#allocation2 + $0x198] sm:$0xff]   ;;  %v8951_v56 = vld [vmem:[#allocation2 + $0x1e0] sm:$0xff]   ;;  %v8955_v60 = vld [vmem:[#allocation2 + $0x1e8] sm:$0xff]  }
  0x39   :  { %7954 = vmatprep.subr.bf16.mxu0 %v8917_v20  ;;  %v8952_v57 = vld [vmem:[#allocation2 + $0x1a0] sm:$0xff]   ;;  %v8956_v61 = vld [vmem:[#allocation2 + $0x1a8] sm:$0xff]   ;;  %v8957_v62 = vld [vmem:[#allocation2 + $0x170] sm:$0xff]  }
  0x3a   :  { %7975 = vmatpush3.bf16.msra.mxu1 %v8916_v19  ;;  %v8958_v63 = vld [vmem:[#allocation2 + $0x130] sm:$0xff]   ;;  %v8961_v2 = vld [vmem:[#allocation2 + $0x178] sm:$0xff]   ;;  %v8967_v9 = vld [vmem:[#allocation2 + $0x240] sm:$0xff]  }
  0x3b   :  { %7976 = vmatprep.subr.bf16.mxu1 %v8919_v22  ;;  %v8959_v0 = vld [vmem:[#allocation2 + $0x1f0] sm:$0xff]   ;;  %v8962_v3 = vld [vmem:[#allocation2 + $0x138] sm:$0xff]   ;;  %v8970_v13 = vld [vmem:[#allocation2 + $0x200] sm:$0xff]  }
  0x3c   :  { %7955 = vmatpush3.bf16.msra.mxu0 %v8918_v21  ;;  %v8960_v1 = vld [vmem:[#allocation2 + $0x1b0] sm:$0xff]   ;;  %v8963_v4 = vld [vmem:[#allocation2 + $0x1f8] sm:$0xff]   ;;  %v8971_v14 = vld [vmem:[#allocation2 + $0x2c0] sm:$0xff]  }
  0x3d   :  { %7956 = vmatprep.subr.bf16.mxu0 %v8921_v24  ;;  %v63_v5 = vld [vmem:[%s9931_s0 + $0x10] sm:$0xff]  ;;  %v8966_v8 = vld [vmem:[#allocation2 + $0x1b8] sm:$0xff]   ;;  %v8972_v15 = vld [vmem:[#allocation2 + $0x280] sm:$0xff]  }
  0x3e   :  { %7977 = vmatpush3.bf16.msra.mxu1 %v8920_v23  ;;  %v7221_v6 = vcombine.low %v63_v5, %v63_v5  ;;  %v7222_v7 = vcombine.high %v63_v5, %v63_v5  ;;  %v64_v10 = vld [vmem:[%s9931_s0 + $0x18] sm:$0xff]  ;;  %v8973_v16 = vld [vmem:[#allocation2 + $0x248] sm:$0xff]   ;;  %v8977_v20 = vld [vmem:[#allocation2 + $0x250] sm:$0xff]  }
  0x3f   :  { %7978 = vmatprep.subr.bf16.mxu1 %v8923_v26  ;;  %v7223_v11 = vcombine.low %v64_v10, %v64_v10  ;;  %v7224_v12 = vcombine.high %v64_v10, %v64_v10  ;;  %v8974_v17 = vld [vmem:[#allocation2 + $0x208] sm:$0xff]   ;;  %v8978_v21 = vld [vmem:[#allocation2 + $0x210] sm:$0xff]   ;;  %v8981_v24 = vld [vmem:[#allocation2 + $0x258] sm:$0xff]  }
  0x40   :  { %7957 = vmatpush3.bf16.msra.mxu0 %v8922_v25  ;;  %v8975_v18 = vld [vmem:[#allocation2 + $0x2c8] sm:$0xff]   ;;  %v8979_v22 = vld [vmem:[#allocation2 + $0x2d0] sm:$0xff]   ;;  %v8982_v25 = vld [vmem:[#allocation2 + $0x218] sm:$0xff]  }
  0x41   :  { %7958 = vmatprep.subr.bf16.mxu0 %v8925_v28  ;;  %v8976_v19 = vld [vmem:[#allocation2 + $0x288] sm:$0xff]   ;;  %v8980_v23 = vld [vmem:[#allocation2 + $0x290] sm:$0xff]   ;;  %v8983_v26 = vld [vmem:[#allocation2 + $0x2d8] sm:$0xff]  }
  0x42   :  { %7979 = vmatpush3.bf16.msra.mxu1 %v8924_v27  ;;  %v8984_v27 = vld [vmem:[#allocation2 + $0x298] sm:$0xff]   ;;  %v8985_v28 = vld [vmem:[#allocation2 + $0x260] sm:$0xff]   ;;  %v8990_v33 = vld [vmem:[#allocation2 + $0x228] sm:$0xff]  }
  0x43   :  { %7980 = vmatprep.subr.bf16.mxu1 %v8927_v30  ;;  %v8987_v30 = vld [vmem:[#allocation2 + $0x2e0] sm:$0xff]   ;;  %v8993_v36 = vld [vmem:[#allocation2 + $0x270] sm:$0xff]  }
  0x44   :  { %7959 = vmatpush3.bf16.msra.mxu0 %v8926_v29  ;;  %v8986_v29 = vld [vmem:[#allocation2 + $0x220] sm:$0xff]   ;;  %v8995_v38 = vld [vmem:[#allocation2 + $0x2f0] sm:$0xff]  }
  0x45   :  { %7988 = vmatprep.subr.bf16.mxu0 %v8931_v35  ;;  %v8988_v31 = vld [vmem:[#allocation2 + $0x2a0] sm:$0xff]   ;;  %v8992_v35 = vld [vmem:[#allocation2 + $0x2a8] sm:$0xff]   ;;  %v9029_v10 = vld [vmem:[#allocation2 + $0x370] sm:$0xff]  }
  0x46   :  { %7981 = vmatpush3.bf16.msra.mxu1 %v8930_v34  ;;  %v8991_v34 = vld [vmem:[#allocation2 + $0x2e8] sm:$0xff]   ;;  %v9024_v5 = vld [vmem:[#allocation2 + $0x3a0] sm:$0xff]  }
  0x47   :  { %5471 = vmatmul.mubr.bf16.vlgmr.msra.gmra.mrb[0].mxu0 %v7217_v32  ;;  %8010 = vmatprep.subr.bf16.mxu1 %v8935_v40  ;;  %v8989_v32 = vld [vmem:[#allocation2 + $0x268] sm:$0xff]   ;;  %v8997_v40 = vld [vmem:[#allocation2 + $0x278] sm:$0xff]  }
  0x48   :  { %7989 = vmatpush3.bf16.msra.mxu0 %v8934_v39  ;;  %5550 = vmatprep.mubr.bf16.mxu0 %v7222_v7  ;;  %v8996_v39 = vld [vmem:[#allocation2 + $0x2b0] sm:$0xff]   ;;  %v9026_v7 = vld [vmem:[#allocation2 + $0x328] sm:$0xff]  }
  0x49   :  { %5511 = vmatmul.mubr.bf16.vlgmr.msra.gmra.mrb[0].mxu1 %v7219_v37  ;;  %7990 = vmatprep.subr.bf16.mxu0 %v8937_v42  ;;  %v8994_v37 = vld [vmem:[#allocation2 + $0x230] sm:$0xff]   ;;  %v8999_v42 = vld [vmem:[#allocation2 + $0x2f8] sm:$0xff]  }
  0x4a   :  { %8011 = vmatpush3.bf16.msra.mxu1 %v8936_v41  ;;  %5590 = vmatprep.mubr.bf16.mxu1 %v7224_v12  ;;  %v8998_v41 = vld [vmem:[#allocation2 + $0x238] sm:$0xff]   ;;  %v9031_v12 = vld [vmem:[#allocation2 + $0x3f0] sm:$0xff]  }
  0x4b   :  { %8012 = vmatprep.subr.bf16.mxu1 %v8939_v44 }
  0x4c   :  { %7991 = vmatpush3.bf16.msra.mxu0 %v8938_v43  ;;  %v65_v43 = vld [vmem:[%s9931_s0 + $0x20] sm:$0xff] }
  0x4d   :  { %7992 = vmatprep.subr.bf16.mxu0 %v8941_v46  ;;  %v7225_v44 = vcombine.low %v65_v43, %v65_v43  ;;  %v9002_v46 = vld [vmem:[#allocation2 + $0x2b8] sm:$0xff]  }
  0x4e   :  { %8013 = vmatpush3.bf16.msra.mxu1 %v8940_v45  ;;  %v7226_v45 = vcombine.high %v65_v43, %v65_v43  ;;  %v9060_v43 = vld [vmem:[#allocation2 + $0x4a0] sm:$0xff]  }
  0x4f   :  { %8014 = vmatprep.subr.bf16.mxu1 %v8943_v48  ;;  %v66_v48 = vld [vmem:[%s9931_s0 + $0x28] sm:$0xff] }
  0x50   :  { %7993 = vmatpush3.bf16.msra.mxu0 %v8942_v47  ;;  %v9003_v47 = vld [vmem:[#allocation2 + $0x340] sm:$0xff]  }
  0x51   :  { %7994 = vmatprep.subr.bf16.mxu0 %v8945_v50  ;;  %v7228_v50 = vcombine.high %v66_v48, %v66_v48 }
  0x52   :  { %8015 = vmatpush3.bf16.msra.mxu1 %v8944_v49  ;;  %v7227_v49 = vcombine.low %v66_v48, %v66_v48  ;;  %v9065_v48 = vld [vmem:[#allocation2 + $0x470] sm:$0xff]  }
  0x53   :  { %8016 = vmatprep.subr.bf16.mxu1 %v8947_v52  ;;  %v9007_v52 = vld [vmem:[#allocation2 + $0x3c0] sm:$0xff]  }
  0x54   :  { %7995 = vmatpush3.bf16.msra.mxu0 %v8946_v51  ;;  %v9006_v51 = vld [vmem:[#allocation2 + $0x300] sm:$0xff]  }
  0x55   :  { %7996 = vmatprep.subr.bf16.mxu0 %v8949_v54  ;;  %v9009_v54 = vld [vmem:[#allocation2 + $0x348] sm:$0xff]  }
  0x56   :  { %8017 = vmatpush3.bf16.msra.mxu1 %v8948_v53  ;;  %v9008_v53 = vld [vmem:[#allocation2 + $0x380] sm:$0xff]  }
  0x57   :  { %8018 = vmatprep.subr.bf16.mxu1 %v8951_v56  ;;  %v9011_v56 = vld [vmem:[#allocation2 + $0x3c8] sm:$0xff]  }
  0x58   :  { %7997 = vmatpush3.bf16.msra.mxu0 %v8950_v55  ;;  %v9010_v55 = vld [vmem:[#allocation2 + $0x308] sm:$0xff]  }
  0x59   :  { %7998 = vmatprep.subr.bf16.mxu0 %v8953_v58  ;;  %v9013_v58 = vld [vmem:[#allocation2 + $0x350] sm:$0xff]  }
  0x5a   :  { %8019 = vmatpush3.bf16.msra.mxu1 %v8952_v57  ;;  %v9012_v57 = vld [vmem:[#allocation2 + $0x388] sm:$0xff]  }
  0x5b   :  { %8020 = vmatprep.subr.bf16.mxu1 %v8955_v60  ;;  %v9015_v60 = vld [vmem:[#allocation2 + $0x3d0] sm:$0xff]  }
  0x5c   :  { %7999 = vmatpush3.bf16.msra.mxu0 %v8954_v59  ;;  %v9014_v59 = vld [vmem:[#allocation2 + $0x310] sm:$0xff]  }
  0x5d   :  { %8000 = vmatprep.subr.bf16.mxu0 %v8957_v62  ;;  %v9017_v62 = vld [vmem:[#allocation2 + $0x358] sm:$0xff]  }
  0x5e   :  { %8021 = vmatpush3.bf16.msra.mxu1 %v8956_v61  ;;  %v9016_v61 = vld [vmem:[#allocation2 + $0x390] sm:$0xff]  }
  0x5f   :  { %8022 = vmatprep.subr.bf16.mxu1 %v8959_v0  ;;  %v9019_v0 = vld [vmem:[#allocation2 + $0x3d8] sm:$0xff]  }
  0x60   :  { %8001 = vmatpush3.bf16.msra.mxu0 %v8958_v63  ;;  %v9018_v63 = vld [vmem:[#allocation2 + $0x318] sm:$0xff]  }
  0x61   :  { %8002 = vmatprep.subr.bf16.mxu0 %v8961_v2  ;;  %v9021_v2 = vld [vmem:[#allocation2 + $0x360] sm:$0xff]  }
  0x62   :  { %8023 = vmatpush3.bf16.msra.mxu1 %v8960_v1  ;;  %v9020_v1 = vld [vmem:[#allocation2 + $0x398] sm:$0xff]  }
  0x63   :  { %8024 = vmatprep.subr.bf16.mxu1 %v8963_v4  ;;  %v9023_v4 = vld [vmem:[#allocation2 + $0x3e0] sm:$0xff]  }
  0x64   :  { %8003 = vmatpush3.bf16.msra.mxu0 %v8962_v3  ;;  %v9022_v3 = vld [vmem:[#allocation2 + $0x320] sm:$0xff]  }
  0x65   :  { %8032 = vmatprep.subr.bf16.mxu0 %v8967_v9  ;;  %v9028_v9 = vld [vmem:[#allocation2 + $0x3a8] sm:$0xff]  }
  0x66   :  { %8025 = vmatpush3.bf16.msra.mxu1 %v8966_v8  ;;  %v9027_v8 = vld [vmem:[#allocation2 + $0x3e8] sm:$0xff]  }
  0x67   :  { %5551 = vmatmul.mubr.bf16.vlgmr.msra.gmra.mrb[4].mxu0 %v7221_v6  ;;  %8054 = vmatprep.subr.bf16.mxu1 %v8971_v14  ;;  %v9025_v6 = vld [vmem:[#allocation2 + $0x368] sm:$0xff]   ;;  %v9033_v14 = vld [vmem:[#allocation2 + $0x378] sm:$0xff]  }
  0x68   :  { %8033 = vmatpush3.bf16.msra.mxu0 %v8970_v13  ;;  %5630 = vmatprep.mubr.bf16.mxu0 %v7226_v45  ;;  %v9032_v13 = vld [vmem:[#allocation2 + $0x3b0] sm:$0xff]   ;;  %v9062_v45 = vld [vmem:[#allocation2 + $0x428] sm:$0xff]  }
  0x69   :  { %5591 = vmatmul.mubr.bf16.vlgmr.msra.gmra.mrb[4].mxu1 %v7223_v11  ;;  %8034 = vmatprep.subr.bf16.mxu0 %v8973_v16  ;;  %v9030_v11 = vld [vmem:[#allocation2 + $0x330] sm:$0xff]   ;;  %v9035_v16 = vld [vmem:[#allocation2 + $0x3f8] sm:$0xff]  }
  0x6a   :  { %8055 = vmatpush3.bf16.msra.mxu1 %v8972_v15  ;;  %5670 = vmatprep.mubr.bf16.mxu1 %v7228_v50  ;;  %v9034_v15 = vld [vmem:[#allocation2 + $0x338] sm:$0xff]   ;;  %v9067_v50 = vld [vmem:[#allocation2 + $0x4f0] sm:$0xff]  }
  0x6b   :  { %8056 = vmatprep.subr.bf16.mxu1 %v8975_v18 }
  0x6c   :  { %8035 = vmatpush3.bf16.msra.mxu0 %v8974_v17  ;;  %v67_v17 = vld [vmem:[%s9931_s0 + $0x30] sm:$0xff] }
  0x6d   :  { %8036 = vmatprep.subr.bf16.mxu0 %v8977_v20  ;;  %v7229_v18 = vcombine.low %v67_v17, %v67_v17  ;;  %v9038_v20 = vld [vmem:[#allocation2 + $0x3b8] sm:$0xff]  }
  0x6e   :  { %8057 = vmatpush3.bf16.msra.mxu1 %v8976_v19  ;;  %v7230_v19 = vcombine.high %v67_v17, %v67_v17  ;;  %v9096_v17 = vld [vmem:[#allocation2 + $0x5a0] sm:$0xff]  }
  0x6f   :  { %8058 = vmatprep.subr.bf16.mxu1 %v8979_v22  ;;  %v68_v22 = vld [vmem:[%s9931_s0 + $0x38] sm:$0xff] }
  0x70   :  { %8037 = vmatpush3.bf16.msra.mxu0 %v8978_v21  ;;  %v9039_v21 = vld [vmem:[#allocation2 + $0x440] sm:$0xff]  }
  0x71   :  { %8038 = vmatprep.subr.bf16.mxu0 %v8981_v24  ;;  %v7232_v24 = vcombine.high %v68_v22, %v68_v22 }
  0x72   :  { %8059 = vmatpush3.bf16.msra.mxu1 %v8980_v23  ;;  %v7231_v23 = vcombine.low %v68_v22, %v68_v22  ;;  %v9101_v22 = vld [vmem:[#allocation2 + $0x570] sm:$0xff]  }
  0x73   :  { %8060 = vmatprep.subr.bf16.mxu1 %v8983_v26  ;;  %v9043_v26 = vld [vmem:[#allocation2 + $0x4c0] sm:$0xff]  }
  0x74   :  { %8039 = vmatpush3.bf16.msra.mxu0 %v8982_v25  ;;  %v9042_v25 = vld [vmem:[#allocation2 + $0x400] sm:$0xff]  }
  0x75   :  { %8040 = vmatprep.subr.bf16.mxu0 %v8985_v28  ;;  %v9045_v28 = vld [vmem:[#allocation2 + $0x448] sm:$0xff]  }
  0x76   :  { %8061 = vmatpush3.bf16.msra.mxu1 %v8984_v27  ;;  %v9044_v27 = vld [vmem:[#allocation2 + $0x480] sm:$0xff]  }
  0x77   :  { %8062 = vmatprep.subr.bf16.mxu1 %v8987_v30  ;;  %v9047_v30 = vld [vmem:[#allocation2 + $0x4c8] sm:$0xff]  }
  0x78   :  { %8041 = vmatpush3.bf16.msra.mxu0 %v8986_v29  ;;  %v9046_v29 = vld [vmem:[#allocation2 + $0x408] sm:$0xff]  }
  0x79   :  { %8042 = vmatprep.subr.bf16.mxu0 %v8989_v32  ;;  %v9049_v32 = vld [vmem:[#allocation2 + $0x450] sm:$0xff]  }
  0x7a   :  { %8063 = vmatpush3.bf16.msra.mxu1 %v8988_v31  ;;  %v9048_v31 = vld [vmem:[#allocation2 + $0x488] sm:$0xff]  }
  0x7b   :  { %8064 = vmatprep.subr.bf16.mxu1 %v8991_v34  ;;  %v9051_v34 = vld [vmem:[#allocation2 + $0x4d0] sm:$0xff]  }
  0x7c   :  { %8043 = vmatpush3.bf16.msra.mxu0 %v8990_v33  ;;  %v9050_v33 = vld [vmem:[#allocation2 + $0x410] sm:$0xff]  }
  0x7d   :  { %8044 = vmatprep.subr.bf16.mxu0 %v8993_v36  ;;  %v9053_v36 = vld [vmem:[#allocation2 + $0x458] sm:$0xff]  }
  0x7e   :  { %8065 = vmatpush3.bf16.msra.mxu1 %v8992_v35  ;;  %v9052_v35 = vld [vmem:[#allocation2 + $0x490] sm:$0xff]  }
  0x7f   :  { %8066 = vmatprep.subr.bf16.mxu1 %v8995_v38  ;;  %v9055_v38 = vld [vmem:[#allocation2 + $0x4d8] sm:$0xff]  }
  0x80   :  { %8045 = vmatpush3.bf16.msra.mxu0 %v8994_v37  ;;  %v9054_v37 = vld [vmem:[#allocation2 + $0x418] sm:$0xff]  }
  0x81   :  { %8046 = vmatprep.subr.bf16.mxu0 %v8997_v40  ;;  %v9057_v40 = vld [vmem:[#allocation2 + $0x460] sm:$0xff]  }
  0x82   :  { %8067 = vmatpush3.bf16.msra.mxu1 %v8996_v39  ;;  %v9056_v39 = vld [vmem:[#allocation2 + $0x498] sm:$0xff]  }
  0x83   :  { %8068 = vmatprep.subr.bf16.mxu1 %v8999_v42  ;;  %v9059_v42 = vld [vmem:[#allocation2 + $0x4e0] sm:$0xff]  }
  0x84   :  { %8047 = vmatpush3.bf16.msra.mxu0 %v8998_v41  ;;  %v9058_v41 = vld [vmem:[#allocation2 + $0x420] sm:$0xff]  }
  0x85   :  { %8076 = vmatprep.subr.bf16.mxu0 %v9003_v47  ;;  %v9064_v47 = vld [vmem:[#allocation2 + $0x4a8] sm:$0xff]  }
  0x86   :  { %8069 = vmatpush3.bf16.msra.mxu1 %v9002_v46  ;;  %v9063_v46 = vld [vmem:[#allocation2 + $0x4e8] sm:$0xff]  }
  0x87   :  { %5631 = vmatmul.mubr.bf16.vlgmr.msra.gmra.mrb[8].mxu0 %v7225_v44  ;;  %8098 = vmatprep.subr.bf16.mxu1 %v9007_v52  ;;  %v9061_v44 = vld [vmem:[#allocation2 + $0x468] sm:$0xff]   ;;  %v9069_v52 = vld [vmem:[#allocation2 + $0x478] sm:$0xff]  }
  0x88   :  { %8077 = vmatpush3.bf16.msra.mxu0 %v9006_v51  ;;  %5710 = vmatprep.mubr.bf16.mxu0 %v7230_v19  ;;  %v9068_v51 = vld [vmem:[#allocation2 + $0x4b0] sm:$0xff]   ;;  %v9098_v19 = vld [vmem:[#allocation2 + $0x528] sm:$0xff]  }
  0x89   :  { %5671 = vmatmul.mubr.bf16.vlgmr.msra.gmra.mrb[8].mxu1 %v7227_v49  ;;  %8078 = vmatprep.subr.bf16.mxu0 %v9009_v54  ;;  %v9066_v49 = vld [vmem:[#allocation2 + $0x430] sm:$0xff]   ;;  %v9071_v54 = vld [vmem:[#allocation2 + $0x4f8] sm:$0xff]  }
  0x8a   :  { %8099 = vmatpush3.bf16.msra.mxu1 %v9008_v53  ;;  %5750 = vmatprep.mubr.bf16.mxu1 %v7232_v24  ;;  %v9070_v53 = vld [vmem:[#allocation2 + $0x438] sm:$0xff]   ;;  %v9103_v24 = vld [vmem:[#allocation2 + $0x5f0] sm:$0xff]  }
  0x8b   :  { %8100 = vmatprep.subr.bf16.mxu1 %v9011_v56 }
  0x8c   :  { %8079 = vmatpush3.bf16.msra.mxu0 %v9010_v55  ;;  %v69_v55 = vld [vmem:[%s9931_s0 + $0x40] sm:$0xff] }
  0x8d   :  { %8080 = vmatprep.subr.bf16.mxu0 %v9013_v58  ;;  %v7233_v56 = vcombine.low %v69_v55, %v69_v55  ;;  %v9074_v58 = vld [vmem:[#allocation2 + $0x4b8] sm:$0xff]  }
  0x8e   :  { %8101 = vmatpush3.bf16.msra.mxu1 %v9012_v57  ;;  %v7234_v57 = vcombine.high %v69_v55, %v69_v55  ;;  %v9132_v55 = vld [vmem:[#allocation2 + $0x6a0] sm:$0xff]  }
  0x8f   :  { %8102 = vmatprep.subr.bf16.mxu1 %v9015_v60  ;;  %v70_v60 = vld [vmem:[%s9931_s0 + $0x48] sm:$0xff] }
  0x90   :  { %8081 = vmatpush3.bf16.msra.mxu0 %v9014_v59  ;;  %v9075_v59 = vld [vmem:[#allocation2 + $0x540] sm:$0xff]  }
  0x91   :  { %8082 = vmatprep.subr.bf16.mxu0 %v9017_v62  ;;  %v7236_v62 = vcombine.high %v70_v60, %v70_v60 }
  0x92   :  { %8103 = vmatpush3.bf16.msra.mxu1 %v9016_v61  ;;  %v7235_v61 = vcombine.low %v70_v60, %v70_v60  ;;  %v9137_v60 = vld [vmem:[#allocation2 + $0x670] sm:$0xff]  }
  0x93   :  { %8104 = vmatprep.subr.bf16.mxu1 %v9019_v0  ;;  %v9079_v0 = vld [vmem:[#allocation2 + $0x5c0] sm:$0xff]  }
  0x94   :  { %8083 = vmatpush3.bf16.msra.mxu0 %v9018_v63  ;;  %v9078_v63 = vld [vmem:[#allocation2 + $0x500] sm:$0xff]  }
  0x95   :  { %8084 = vmatprep.subr.bf16.mxu0 %v9021_v2  ;;  %v9081_v2 = vld [vmem:[#allocation2 + $0x548] sm:$0xff]  }
  0x96   :  { %8105 = vmatpush3.bf16.msra.mxu1 %v9020_v1  ;;  %v9080_v1 = vld [vmem:[#allocation2 + $0x580] sm:$0xff]  }
  0x97   :  { %8106 = vmatprep.subr.bf16.mxu1 %v9023_v4  ;;  %v9083_v4 = vld [vmem:[#allocation2 + $0x5c8] sm:$0xff]  }
  0x98   :  { %8085 = vmatpush3.bf16.msra.mxu0 %v9022_v3  ;;  %v9082_v3 = vld [vmem:[#allocation2 + $0x508] sm:$0xff]  }
  0x99   :  { %8086 = vmatprep.subr.bf16.mxu0 %v9025_v6  ;;  %v9085_v6 = vld [vmem:[#allocation2 + $0x550] sm:$0xff]  }
  0x9a   :  { %8107 = vmatpush3.bf16.msra.mxu1 %v9024_v5  ;;  %v9084_v5 = vld [vmem:[#allocation2 + $0x588] sm:$0xff]  }
  0x9b   :  { %8108 = vmatprep.subr.bf16.mxu1 %v9027_v8  ;;  %v9087_v8 = vld [vmem:[#allocation2 + $0x5d0] sm:$0xff]  }
  0x9c   :  { %8087 = vmatpush3.bf16.msra.mxu0 %v9026_v7  ;;  %v9086_v7 = vld [vmem:[#allocation2 + $0x510] sm:$0xff]  }
  0x9d   :  { %8088 = vmatprep.subr.bf16.mxu0 %v9029_v10  ;;  %v9089_v10 = vld [vmem:[#allocation2 + $0x558] sm:$0xff]  }
  0x9e   :  { %8109 = vmatpush3.bf16.msra.mxu1 %v9028_v9  ;;  %v9088_v9 = vld [vmem:[#allocation2 + $0x590] sm:$0xff]  }
  0x9f   :  { %8110 = vmatprep.subr.bf16.mxu1 %v9031_v12  ;;  %v9091_v12 = vld [vmem:[#allocation2 + $0x5d8] sm:$0xff]  }
  0xa0   :  { %8089 = vmatpush3.bf16.msra.mxu0 %v9030_v11  ;;  %v9090_v11 = vld [vmem:[#allocation2 + $0x518] sm:$0xff]  }
  0xa1   :  { %8090 = vmatprep.subr.bf16.mxu0 %v9033_v14  ;;  %v9093_v14 = vld [vmem:[#allocation2 + $0x560] sm:$0xff]  }
  0xa2   :  { %8111 = vmatpush3.bf16.msra.mxu1 %v9032_v13  ;;  %v9092_v13 = vld [vmem:[#allocation2 + $0x598] sm:$0xff]  }
  0xa3   :  { %8112 = vmatprep.subr.bf16.mxu1 %v9035_v16  ;;  %v9095_v16 = vld [vmem:[#allocation2 + $0x5e0] sm:$0xff]  }
  0xa4   :  { %8091 = vmatpush3.bf16.msra.mxu0 %v9034_v15  ;;  %v9094_v15 = vld [vmem:[#allocation2 + $0x520] sm:$0xff]  }
  0xa5   :  { %8120 = vmatprep.subr.bf16.mxu0 %v9039_v21  ;;  %v9100_v21 = vld [vmem:[#allocation2 + $0x5a8] sm:$0xff]  }
  0xa6   :  { %8113 = vmatpush3.bf16.msra.mxu1 %v9038_v20  ;;  %v9099_v20 = vld [vmem:[#allocation2 + $0x5e8] sm:$0xff]  }
  0xa7   :  { %5711 = vmatmul.mubr.bf16.vlgmr.msra.gmra.mrb[12].mxu0 %v7229_v18  ;;  %8142 = vmatprep.subr.bf16.mxu1 %v9043_v26  ;;  %v9097_v18 = vld [vmem:[#allocation2 + $0x568] sm:$0xff]   ;;  %v9105_v26 = vld [vmem:[#allocation2 + $0x578] sm:$0xff]  }
  0xa8   :  { %8121 = vmatpush3.bf16.msra.mxu0 %v9042_v25  ;;  %5790 = vmatprep.mubr.bf16.mxu0 %v7234_v57  ;;  %v9104_v25 = vld [vmem:[#allocation2 + $0x5b0] sm:$0xff]   ;;  %v9134_v57 = vld [vmem:[#allocation2 + $0x628] sm:$0xff]  }
  0xa9   :  { %5751 = vmatmul.mubr.bf16.vlgmr.msra.gmra.mrb[12].mxu1 %v7231_v23  ;;  %8122 = vmatprep.subr.bf16.mxu0 %v9045_v28  ;;  %v9102_v23 = vld [vmem:[#allocation2 + $0x530] sm:$0xff]   ;;  %v9107_v28 = vld [vmem:[#allocation2 + $0x5f8] sm:$0xff]  }
  0xaa   :  { %8143 = vmatpush3.bf16.msra.mxu1 %v9044_v27  ;;  %5830 = vmatprep.mubr.bf16.mxu1 %v7236_v62  ;;  %v9106_v27 = vld [vmem:[#allocation2 + $0x538] sm:$0xff]   ;;  %v9139_v62 = vld [vmem:[#allocation2 + $0x6f0] sm:$0xff]  }
  0xab   :  { %8144 = vmatprep.subr.bf16.mxu1 %v9047_v30 }
  0xac   :  { %8123 = vmatpush3.bf16.msra.mxu0 %v9046_v29  ;;  %v71_v29 = vld [vmem:[%s9931_s0 + $0x50] sm:$0xff] }
  0xad   :  { %8124 = vmatprep.subr.bf16.mxu0 %v9049_v32  ;;  %v7237_v30 = vcombine.low %v71_v29, %v71_v29  ;;  %v9110_v32 = vld [vmem:[#allocation2 + $0x5b8] sm:$0xff]  }
  0xae   :  { %8145 = vmatpush3.bf16.msra.mxu1 %v9048_v31  ;;  %v7238_v31 = vcombine.high %v71_v29, %v71_v29 }
  0xaf   :  { %8146 = vmatprep.subr.bf16.mxu1 %v9051_v34  ;;  %v72_v34 = vld [vmem:[%s9931_s0 + $0x58] sm:$0xff] }
  0xb0   :  { %8125 = vmatpush3.bf16.msra.mxu0 %v9050_v33  ;;  %v9111_v33 = vld [vmem:[#allocation2 + $0x640] sm:$0xff]  }
  0xb1   :  { %8126 = vmatprep.subr.bf16.mxu0 %v9053_v36  ;;  %v7240_v36 = vcombine.high %v72_v34, %v72_v34 }
  0xb2   :  { %8147 = vmatpush3.bf16.msra.mxu1 %v9052_v35  ;;  %v7239_v35 = vcombine.low %v72_v34, %v72_v34  ;;  %v9168_v34 = vld [vmem:[#allocation2 + $0x7a0] sm:$0xff]  }
  0xb3   :  { %8148 = vmatprep.subr.bf16.mxu1 %v9055_v38  ;;  %v9115_v38 = vld [vmem:[#allocation2 + $0x6c0] sm:$0xff]  }
  0xb4   :  { %8127 = vmatpush3.bf16.msra.mxu0 %v9054_v37  ;;  %v9114_v37 = vld [vmem:[#allocation2 + $0x600] sm:$0xff]  }
  0xb5   :  { %8128 = vmatprep.subr.bf16.mxu0 %v9057_v40  ;;  %v9117_v40 = vld [vmem:[#allocation2 + $0x648] sm:$0xff]  }
  0xb6   :  { %8149 = vmatpush3.bf16.msra.mxu1 %v9056_v39  ;;  %v9116_v39 = vld [vmem:[#allocation2 + $0x680] sm:$0xff]  }
  0xb7   :  { %8150 = vmatprep.subr.bf16.mxu1 %v9059_v42  ;;  %v9119_v42 = vld [vmem:[#allocation2 + $0x6c8] sm:$0xff]  }
  0xb8   :  { %8129 = vmatpush3.bf16.msra.mxu0 %v9058_v41  ;;  %v9118_v41 = vld [vmem:[#allocation2 + $0x608] sm:$0xff]  }
  0xb9   :  { %8130 = vmatprep.subr.bf16.mxu0 %v9061_v44  ;;  %v9121_v44 = vld [vmem:[#allocation2 + $0x650] sm:$0xff]  }
  0xba   :  { %8151 = vmatpush3.bf16.msra.mxu1 %v9060_v43  ;;  %v9120_v43 = vld [vmem:[#allocation2 + $0x688] sm:$0xff]  }
  0xbb   :  { %8152 = vmatprep.subr.bf16.mxu1 %v9063_v46  ;;  %v9123_v46 = vld [vmem:[#allocation2 + $0x6d0] sm:$0xff]  }
  0xbc   :  { %8131 = vmatpush3.bf16.msra.mxu0 %v9062_v45  ;;  %v9122_v45 = vld [vmem:[#allocation2 + $0x610] sm:$0xff]  }
  0xbd   :  { %8132 = vmatprep.subr.bf16.mxu0 %v9065_v48  ;;  %v9125_v48 = vld [vmem:[#allocation2 + $0x658] sm:$0xff]  }
  0xbe   :  { %8153 = vmatpush3.bf16.msra.mxu1 %v9064_v47  ;;  %v9124_v47 = vld [vmem:[#allocation2 + $0x690] sm:$0xff]  }
  0xbf   :  { %8154 = vmatprep.subr.bf16.mxu1 %v9067_v50  ;;  %v9127_v50 = vld [vmem:[#allocation2 + $0x6d8] sm:$0xff]  }
  0xc0   :  { %8133 = vmatpush3.bf16.msra.mxu0 %v9066_v49  ;;  %v9126_v49 = vld [vmem:[#allocation2 + $0x618] sm:$0xff]  }
  0xc1   :  { %8134 = vmatprep.subr.bf16.mxu0 %v9069_v52  ;;  %v9129_v52 = vld [vmem:[#allocation2 + $0x660] sm:$0xff]  }
  0xc2   :  { %8155 = vmatpush3.bf16.msra.mxu1 %v9068_v51  ;;  %v9128_v51 = vld [vmem:[#allocation2 + $0x698] sm:$0xff]  }
  0xc3   :  { %8156 = vmatprep.subr.bf16.mxu1 %v9071_v54  ;;  %v9131_v54 = vld [vmem:[#allocation2 + $0x6e0] sm:$0xff]  }
  0xc4   :  { %8135 = vmatpush3.bf16.msra.mxu0 %v9070_v53  ;;  %v9130_v53 = vld [vmem:[#allocation2 + $0x620] sm:$0xff]  }
  0xc5   :  { %8164 = vmatprep.subr.bf16.mxu0 %v9075_v59  ;;  %v9136_v59 = vld [vmem:[#allocation2 + $0x6a8] sm:$0xff]  }
  0xc6   :  { %8157 = vmatpush3.bf16.msra.mxu1 %v9074_v58  ;;  %v9135_v58 = vld [vmem:[#allocation2 + $0x6e8] sm:$0xff]  }
  0xc7   :  { %5791 = vmatmul.mubr.bf16.vlgmr.msra.gmra.mrb[16].mxu0 %v7233_v56  ;;  %8186 = vmatprep.subr.bf16.mxu1 %v9079_v0  ;;  %v9133_v56 = vld [vmem:[#allocation2 + $0x668] sm:$0xff]   ;;  %v9141_v0 = vld [vmem:[#allocation2 + $0x678] sm:$0xff]  }
  0xc8   :  { %8165 = vmatpush3.bf16.msra.mxu0 %v9078_v63  ;;  %5870 = vmatprep.mubr.bf16.mxu0 %v7238_v31  ;;  %v9140_v63 = vld [vmem:[#allocation2 + $0x6b0] sm:$0xff]  }
  0xc9   :  { %5831 = vmatmul.mubr.bf16.vlgmr.msra.gmra.mrb[16].mxu1 %v7235_v61  ;;  %8166 = vmatprep.subr.bf16.mxu0 %v9081_v2  ;;  %v9138_v61 = vld [vmem:[#allocation2 + $0x630] sm:$0xff]   ;;  %v9143_v2 = vld [vmem:[#allocation2 + $0x6f8] sm:$0xff]  }
  0xca   :  { %8187 = vmatpush3.bf16.msra.mxu1 %v9080_v1  ;;  %5910 = vmatprep.mubr.bf16.mxu1 %v7240_v36  ;;  %v9142_v1 = vld [vmem:[#allocation2 + $0x638] sm:$0xff]  }
  0xcb   :  { %8188 = vmatprep.subr.bf16.mxu1 %v9083_v4 }
  0xcc   :  { %8167 = vmatpush3.bf16.msra.mxu0 %v9082_v3  ;;  %v73_v3 = vld [vmem:[%s9931_s0 + $0x60] sm:$0xff] }
  0xcd   :  { %8168 = vmatprep.subr.bf16.mxu0 %v9085_v6  ;;  %v7241_v4 = vcombine.low %v73_v3, %v73_v3  ;;  %v9146_v6 = vld [vmem:[#allocation2 + $0x6b8] sm:$0xff]  }
  0xce   :  { %8189 = vmatpush3.bf16.msra.mxu1 %v9084_v5  ;;  %v7242_v5 = vcombine.high %v73_v3, %v73_v3  ;;  %v9186_v3 = vld [vmem:[#allocation2 + $0x800] sm:$0xff]  }
  0xcf   :  { %8190 = vmatprep.subr.bf16.mxu1 %v9087_v8  ;;  %v74_v8 = vld [vmem:[%s9931_s0 + $0x68] sm:$0xff] }
  0xd0   :  { %8169 = vmatpush3.bf16.msra.mxu0 %v9086_v7  ;;  %v9147_v7 = vld [vmem:[#allocation2 + $0x740] sm:$0xff]  }
  0xd1   :  { %8170 = vmatprep.subr.bf16.mxu0 %v9089_v10  ;;  %v7244_v10 = vcombine.high %v74_v8, %v74_v8 }
  0xd2   :  { %8191 = vmatpush3.bf16.msra.mxu1 %v9088_v9  ;;  %v7243_v9 = vcombine.low %v74_v8, %v74_v8  ;;  %v9191_v8 = vld [vmem:[#allocation2 + $0x8c8] sm:$0xff]  }
  0xd3   :  { %8192 = vmatprep.subr.bf16.mxu1 %v9091_v12  ;;  %v9151_v12 = vld [vmem:[#allocation2 + $0x7c0] sm:$0xff]  }
  0xd4   :  { %8171 = vmatpush3.bf16.msra.mxu0 %v9090_v11  ;;  %v9150_v11 = vld [vmem:[#allocation2 + $0x700] sm:$0xff]  }
  0xd5   :  { %8172 = vmatprep.subr.bf16.mxu0 %v9093_v14  ;;  %v9153_v14 = vld [vmem:[#allocation2 + $0x748] sm:$0xff]  }
  0xd6   :  { %8193 = vmatpush3.bf16.msra.mxu1 %v9092_v13  ;;  %v9152_v13 = vld [vmem:[#allocation2 + $0x780] sm:$0xff]  }
  0xd7   :  { %8194 = vmatprep.subr.bf16.mxu1 %v9095_v16  ;;  %v9155_v16 = vld [vmem:[#allocation2 + $0x7c8] sm:$0xff]  }
  0xd8   :  { %8173 = vmatpush3.bf16.msra.mxu0 %v9094_v15  ;;  %v9154_v15 = vld [vmem:[#allocation2 + $0x708] sm:$0xff]  }
  0xd9   :  { %8174 = vmatprep.subr.bf16.mxu0 %v9097_v18  ;;  %v9157_v18 = vld [vmem:[#allocation2 + $0x750] sm:$0xff]  }
  0xda   :  { %8195 = vmatpush3.bf16.msra.mxu1 %v9096_v17  ;;  %v9156_v17 = vld [vmem:[#allocation2 + $0x788] sm:$0xff]  }
  0xdb   :  { %8196 = vmatprep.subr.bf16.mxu1 %v9099_v20  ;;  %v9158_v20 = vld [vmem:[#allocation2 + $0x710] sm:$0xff]  }
  0xdc   :  { %8175 = vmatpush3.bf16.msra.mxu0 %v9098_v19  ;;  %v1365_v19 = vlaneseq }
  0xdd   :  { %8176 = vmatprep.subr.bf16.mxu0 %v9101_v22  ;;  %v9160_v22 = vld [vmem:[#allocation2 + $0x790] sm:$0xff]  }
  0xde   :  { %8197 = vmatpush3.bf16.msra.mxu1 %v9100_v21  ;;  %v9159_v21 = vld [vmem:[#allocation2 + $0x7d0] sm:$0xff]  }
  0xdf   :  { %8198 = vmatprep.subr.bf16.mxu1 %v9103_v24  ;;  %v9774_v24 = vshrl.u32 %v1365_v19, 7 }
  0xe0   :  { %8177 = vmatpush3.bf16.msra.mxu0 %v9102_v23  ;;  %v9161_v23 = vld [vmem:[#allocation2 + $0x758] sm:$0xff]  }
  0xe1   :  { %8178 = vmatprep.subr.bf16.mxu0 %v9105_v26  ;;  %v9163_v26 = vld [vmem:[#allocation2 + $0x7d8] sm:$0xff]   ;;  %v1367_v29 = vsub.s32 0, %v9774_v24 }
  0xe2   :  { %8199 = vmatpush3.bf16.msra.mxu1 %v9104_v25  ;;  %v9162_v25 = vld [vmem:[#allocation2 + $0x718] sm:$0xff]  }
  0xe3   :  { %8200 = vmatprep.subr.bf16.mxu1 %v9107_v28  ;;  %v9165_v28 = vld [vmem:[#allocation2 + $0x760] sm:$0xff]  }
  0xe4   :  { %8179 = vmatpush3.bf16.msra.mxu0 %v9106_v27  ;;  %v9164_v27 = vld [vmem:[#allocation2 + $0x798] sm:$0xff]  }
  0xe5   :  { %8208 = vmatprep.subr.bf16.mxu0 %v9111_v33 }
  0xe6   :  { %8201 = vmatpush3.bf16.msra.mxu1 %v9110_v32  ;;  %v9167_v32 = vld [vmem:[#allocation2 + $0x7e0] sm:$0xff]  }
  0xe7   :  { %5871 = vmatmul.mubr.bf16.vlgmr.msra.gmra.mrb[20].mxu0 %v7237_v30  ;;  %8230 = vmatprep.subr.bf16.mxu1 %v9115_v38  ;;  %v9166_v30 = vld [vmem:[#allocation2 + $0x720] sm:$0xff]  }
  0xe8   :  { %8209 = vmatpush3.bf16.msra.mxu0 %v9114_v37  ;;  %5950 = vmatprep.mubr.bf16.mxu0 %v7242_v5  ;;  %v9188_v5 = vld [vmem:[#allocation2 + $0x880] sm:$0xff]  }
  0xe9   :  { %5911 = vmatmul.mubr.bf16.vlgmr.msra.gmra.mrb[20].mxu1 %v7239_v35  ;;  %8210 = vmatprep.subr.bf16.mxu0 %v9117_v40  ;;  %v44_v35 = vld [vmem:[#allocation4 + $0x8] sm:$0xf] }
  0xea   :  { %8231 = vmatpush3.bf16.msra.mxu1 %v9116_v39  ;;  %5990 = vmatprep.mubr.bf16.mxu1 %v7244_v10  ;;  %v9777_v38 = vunpack.c.l.bf16 %v44_v35  ;;  %v9169_v39 = vld [vmem:[#allocation2 + $0x768] sm:$0xff]   ;;  %v9193_v10 = vld [vmem:[#allocation2 + $0x850] sm:$0xff]  }
  0xeb   :  { %8232 = vmatprep.subr.bf16.mxu1 %v9119_v42 }
  0xec   :  { %8211 = vmatpush3.bf16.msra.mxu0 %v9118_v41  ;;  %v9170_v41 = vld [vmem:[#allocation2 + $0x728] sm:$0xff]  }
  0xed   :  { %8212 = vmatprep.subr.bf16.mxu0 %v9121_v44 }
  0xee   :  { %8233 = vmatpush3.bf16.msra.mxu1 %v9120_v43  ;;  %v1368_v43 = vrot.slane %v9777_v38, %v1367_v29  ;;  %v9205_v29 = vld [vmem:[#allocation2 + $0x868] sm:$0xff]  }
  0xef   :  { %8234 = vmatprep.subr.bf16.mxu1 %v9123_v46 }
  0xf0   :  { %8213 = vmatpush3.bf16.msra.mxu0 %v9122_v45  ;;  %v9171_v45 = vld [vmem:[#allocation2 + $0x7e8] sm:$0xff]  }
  0xf1   :  { %8214 = vmatprep.subr.bf16.mxu0 %v9125_v48 }
  0xf2   :  { %8235 = vmatpush3.bf16.msra.mxu1 %v9124_v47  ;;  %v9172_v47 = vld [vmem:[#allocation2 + $0x7a8] sm:$0xff]  }
  0xf3   :  { %8236 = vmatprep.subr.bf16.mxu1 %v9127_v50  ;;  %v9173_v50 = vld [vmem:[#allocation2 + $0x770] sm:$0xff]  }
  0xf4   :  { %8215 = vmatpush3.bf16.msra.mxu0 %v9126_v49 }
  0xf5   :  { %8216 = vmatprep.subr.bf16.mxu0 %v9129_v52  ;;  %v9174_v52 = vld [vmem:[#allocation2 + $0x730] sm:$0xff]  }
  0xf6   :  { %8237 = vmatpush3.bf16.msra.mxu1 %v9128_v51 }
  0xf7   :  { %8238 = vmatprep.subr.bf16.mxu1 %v9131_v54  ;;  %v9175_v54 = vld [vmem:[#allocation2 + $0x7f0] sm:$0xff]  }
  0xf8   :  { %8217 = vmatpush3.bf16.msra.mxu0 %v9130_v53 }
  0xf9   :  { %8218 = vmatprep.subr.bf16.mxu0 %v9133_v56  ;;  %v9177_v56 = vld [vmem:[#allocation2 + $0x778] sm:$0xff]  }
  0xfa   :  { %8239 = vmatpush3.bf16.msra.mxu1 %v9132_v55  ;;  %v9176_v55 = vld [vmem:[#allocation2 + $0x7b0] sm:$0xff]  }
  0xfb   :  { %8240 = vmatprep.subr.bf16.mxu1 %v9135_v58  ;;  %v9179_v58 = vld [vmem:[#allocation2 + $0x7f8] sm:$0xff]  }
  0xfc   :  { %8219 = vmatpush3.bf16.msra.mxu0 %v9134_v57  ;;  %v9178_v57 = vld [vmem:[#allocation2 + $0x738] sm:$0xff]  }
  0xfd   :  { %8220 = vmatprep.subr.bf16.mxu0 %v9137_v60 }
  0xfe   :  { %8241 = vmatpush3.bf16.msra.mxu1 %v9136_v59  ;;  %v75_v59 = vld [vmem:[%s9931_s0 + $0x70] sm:$0xff] }
  0xff   :  { %8242 = vmatprep.subr.bf16.mxu1 %v9139_v62  ;;  %v7245_v60 = vcombine.low %v75_v59, %v75_v59  ;;  %v9182_v62 = vld [vmem:[#allocation2 + $0x7b8] sm:$0xff]  }
 0x100   :  { %8221 = vmatpush3.bf16.msra.mxu0 %v9138_v61  ;;  %v7246_v61 = vcombine.high %v75_v59, %v75_v59  ;;  %v9226_v59 = vld [vmem:[#allocation2 + $0x908] sm:$0xff]  }
 0x101   :  { %8222 = vmatprep.subr.bf16.mxu0 %v9141_v0  ;;  %v76_v0 = vld [vmem:[%s9931_s0 + $0x78] sm:$0xff] }
 0x102   :  { %8243 = vmatpush3.bf16.msra.mxu1 %v9140_v63  ;;  %v9183_v63 = vld [vmem:[#allocation2 + $0x840] sm:$0xff]  }
 0x103   :  { %8244 = vmatprep.subr.bf16.mxu1 %v9143_v2  ;;  %v7248_v2 = vcombine.high %v76_v0, %v76_v0 }
 0x104   :  { %8223 = vmatpush3.bf16.msra.mxu0 %v9142_v1  ;;  %v7247_v1 = vcombine.low %v76_v0, %v76_v0  ;;  %v9231_v0 = vld [vmem:[#allocation2 + $0x9d0] sm:$0xff]  }
 0x105   :  { %8252 = vmatprep.subr.bf16.mxu0 %v9147_v7  ;;  %v9190_v7 = vld [vmem:[#allocation2 + $0x808] sm:$0xff]  }
 0x106   :  { %8245 = vmatpush3.bf16.msra.mxu1 %v9146_v6  ;;  %v9189_v6 = vld [vmem:[#allocation2 + $0x848] sm:$0xff]  }
 0x107   :  { %5951 = vmatmul.mubr.bf16.vlgmr.msra.gmra.mrb[24].mxu0 %v7241_v4  ;;  %8274 = vmatprep.subr.bf16.mxu1 %v9151_v12  ;;  %v9187_v4 = vld [vmem:[#allocation2 + $0x8c0] sm:$0xff]   ;;  %v9195_v12 = vld [vmem:[#allocation2 + $0x8d0] sm:$0xff]  }
 0x108   :  { %8253 = vmatpush3.bf16.msra.mxu0 %v9150_v11  ;;  %6030 = vmatprep.mubr.bf16.mxu0 %v7246_v61  ;;  %v9194_v11 = vld [vmem:[#allocation2 + $0x810] sm:$0xff]   ;;  %v9228_v61 = vld [vmem:[#allocation2 + $0x988] sm:$0xff]  }
 0x109   :  { %5991 = vmatmul.mubr.bf16.vlgmr.msra.gmra.mrb[24].mxu1 %v7243_v9  ;;  %8254 = vmatprep.subr.bf16.mxu0 %v9153_v14  ;;  %v9192_v9 = vld [vmem:[#allocation2 + $0x888] sm:$0xff]   ;;  %v9197_v14 = vld [vmem:[#allocation2 + $0x858] sm:$0xff]  }
 0x10a   :  { %8275 = vmatpush3.bf16.msra.mxu1 %v9152_v13  ;;  %6070 = vmatprep.mubr.bf16.mxu1 %v7248_v2  ;;  %v9196_v13 = vld [vmem:[#allocation2 + $0x890] sm:$0xff]   ;;  %v9233_v2 = vld [vmem:[#allocation2 + $0x958] sm:$0xff]  }
 0x10b   :  { %8276 = vmatprep.subr.bf16.mxu1 %v9155_v16  ;;  %v9199_v16 = vld [vmem:[#allocation2 + $0x8d8] sm:$0xff]  }
 0x10c   :  { %8255 = vmatpush3.bf16.msra.mxu0 %v9154_v15  ;;  %v9198_v15 = vld [vmem:[#allocation2 + $0x818] sm:$0xff]  }
 0x10d   :  { %8256 = vmatprep.subr.bf16.mxu0 %v9157_v18  ;;  %v9201_v18 = vld [vmem:[#allocation2 + $0x860] sm:$0xff]  }
 0x10e   :  { %8277 = vmatpush3.bf16.msra.mxu1 %v9156_v17  ;;  %v9200_v17 = vld [vmem:[#allocation2 + $0x898] sm:$0xff]  }
 0x10f   :  { %8278 = vmatprep.subr.bf16.mxu1 %v9159_v21 }
 0x110   :  { %8257 = vmatpush3.bf16.msra.mxu0 %v9158_v20  ;;  %v9202_v20 = vld [vmem:[#allocation2 + $0x820] sm:$0xff]  }
 0x111   :  { %8258 = vmatprep.subr.bf16.mxu0 %v9161_v23 }
 0x112   :  { %8279 = vmatpush3.bf16.msra.mxu1 %v9160_v22  ;;  %v9203_v22 = vld [vmem:[#allocation2 + $0x8e0] sm:$0xff]  }
 0x113   :  { %8280 = vmatprep.subr.bf16.mxu1 %v9163_v26  ;;  %v9204_v26 = vld [vmem:[#allocation2 + $0x8a0] sm:$0xff]  }
 0x114   :  { %8259 = vmatpush3.bf16.msra.mxu0 %v9162_v25 }
 0x115   :  { %8260 = vmatprep.subr.bf16.mxu0 %v9165_v28 }
 0x116   :  { %8281 = vmatpush3.bf16.msra.mxu1 %v9164_v27 }
 0x117   :  { %8282 = vmatprep.subr.bf16.mxu1 %v9167_v32 }
 0x118   :  { %8261 = vmatpush3.bf16.msra.mxu0 %v9166_v30 }
 0x119   :  { %8262 = vmatprep.subr.bf16.mxu0 %v9169_v39 }
 0x11a   :  { %v7960_v31 = vpop.f32.mrb[0].mxu0  ;;  %8283 = vmatpush3.bf16.msra.mxu1 %v9168_v34  ;;  %v9207_v34 = vld [vmem:[#allocation2 + $0x8e8] sm:$0xff]  }
 0x11b   :  { %v7961_v33 = vpop.f32.mrb[1].mxu0  ;;  %8284 = vmatprep.subr.bf16.mxu1 %v9171_v45  ;;  %v9214_v45 = vld [vmem:[#allocation2 + $0x838] sm:$0xff]  }
 0x11c   :  { %v7962_v36 = vadd.f32 %v7961_v33, %v7960_v31  ;;  %v7963_v37 = vpop.f32.mrb[2].mxu0  ;;  %v7982_v40 = vpop.f32.mrb[0].mxu1  ;;  %8263 = vmatpush3.bf16.msra.mxu0 %v9170_v41  ;;  %v9206_v31 = vld [vmem:[#allocation2 + $0x828] sm:$0xff]   ;;  %v9210_v41 = vld [vmem:[#allocation2 + $0x830] sm:$0xff]  }
 0x11d   :  { %v7964_v42 = vpop.f32.mrb[3].mxu0  ;;  %v7983_v44 = vpop.f32.mrb[1].mxu1  ;;  %8264 = vmatprep.subr.bf16.mxu0 %v9173_v50  ;;  %v9218_v50 = vld [vmem:[#allocation2 + $0x8b8] sm:$0xff]  }
 0x11e   :  { %v7984_v46 = vadd.f32 %v7983_v44, %v7982_v40  ;;  %v7985_v48 = vpop.f32.mrb[2].mxu1  ;;  %v5473_v49 = vadd.f32 %v7962_v36, %v1368_v43  ;;  %8285 = vmatpush3.bf16.msra.mxu1 %v9172_v47  ;;  %v9208_v36 = vld [vmem:[#allocation2 + $0x8a8] sm:$0xff]   ;;  %v9209_v40 = vld [vmem:[#allocation2 + $0x870] sm:$0xff]   ;;  %v9213_v44 = vld [vmem:[#allocation2 + $0x878] sm:$0xff]  }
 0x11f   :  { %v7986_v51 = vpop.f32.mrb[3].mxu1  ;;  %8286 = vmatprep.subr.bf16.mxu1 %v9175_v54  ;;  %v9211_v42 = vld [vmem:[#allocation2 + $0x8f0] sm:$0xff]   ;;  %v77_v47 = vld [vmem:[%s9931_s0 + $0x80] sm:$0xff] }
 0x120   :  { %v9780_v53 = vadd.f32 %v7984_v46, %v5473_v49  ;;  %8265 = vmatpush3.bf16.msra.mxu0 %v9174_v52  ;;  %v9212_v43 = vld [vmem:[#allocation2 + $0x8b0] sm:$0xff]   ;;  %v9215_v46 = vld [vmem:[#allocation2 + $0x8f8] sm:$0xff]   ;;  %v7249_v48 = vcombine.low %v77_v47, %v77_v47  ;;  %v7250_v49 = vcombine.high %v77_v47, %v77_v47  ;;  %v9219_v51 = vld [vmem:[#allocation2 + $0x940] sm:$0xff]  }
 0x121   :  { %8266 = vmatprep.subr.bf16.mxu0 %v9177_v56  ;;  %v78_v52 = vld [vmem:[%s9931_s0 + $0x88] sm:$0xff]  ;;  %v9223_v56 = vld [vmem:[#allocation2 + $0x9c0] sm:$0xff]  }
 0x122   :  { %8287 = vmatpush3.bf16.msra.mxu1 %v9176_v55  ;;  %v7252_v54 = vcombine.high %v78_v52, %v78_v52  ;;  %v9222_v55 = vld [vmem:[#allocation2 + $0x900] sm:$0xff]   ;;  %v9262_v47 = vld [vmem:[#allocation2 + $0xa08] sm:$0xff]  }
 0x123   :  { %8288 = vmatprep.subr.bf16.mxu1 %v9179_v58  ;;  %v9225_v58 = vld [vmem:[#allocation2 + $0x948] sm:$0xff]  }
 0x124   :  { %8267 = vmatpush3.bf16.msra.mxu0 %v9178_v57  ;;  %v9224_v57 = vld [vmem:[#allocation2 + $0x980] sm:$0xff]  }
 0x125   :  { %8296 = vmatprep.subr.bf16.mxu0 %v9183_v63  ;;  %v9230_v63 = vld [vmem:[#allocation2 + $0x910] sm:$0xff]  }
 0x126   :  { %8289 = vmatpush3.bf16.msra.mxu1 %v9182_v62  ;;  %v9229_v62 = vld [vmem:[#allocation2 + $0x950] sm:$0xff]  }
 0x127   :  { %6031 = vmatmul.mubr.bf16.vlgmr.msra.gmra.mrb[28].mxu0 %v7245_v60  ;;  %8318 = vmatprep.subr.bf16.mxu1 %v9187_v4  ;;  %v9227_v60 = vld [vmem:[#allocation2 + $0x9c8] sm:$0xff]   ;;  %v9235_v4 = vld [vmem:[#allocation2 + $0x9d8] sm:$0xff]  }
 0x128   :  { %8297 = vmatpush3.bf16.msra.mxu0 %v9186_v3  ;;  %6110 = vmatprep.mubr.bf16.mxu0 %v7250_v49  ;;  %v9234_v3 = vld [vmem:[#allocation2 + $0x918] sm:$0xff]   ;;  %v9264_v49 = vld [vmem:[#allocation2 + $0xa88] sm:$0xff]  }
 0x129   :  { %6071 = vmatmul.mubr.bf16.vlgmr.msra.gmra.mrb[28].mxu1 %v7247_v1  ;;  %8298 = vmatprep.subr.bf16.mxu0 %v9189_v6  ;;  %v9232_v1 = vld [vmem:[#allocation2 + $0x990] sm:$0xff]   ;;  %v9237_v6 = vld [vmem:[#allocation2 + $0x960] sm:$0xff]  }
 0x12a   :  { %8319 = vmatpush3.bf16.msra.mxu1 %v9188_v5  ;;  %6150 = vmatprep.mubr.bf16.mxu1 %v7252_v54  ;;  %v9236_v5 = vld [vmem:[#allocation2 + $0x998] sm:$0xff]  }
 0x12b   :  { %8320 = vmatprep.subr.bf16.mxu1 %v9191_v8  ;;  %v9238_v8 = vld [vmem:[#allocation2 + $0x920] sm:$0xff]   ;;  %v9269_v54 = vld [vmem:[#allocation2 + $0xa58] sm:$0xff]  }
 0x12c   :  { %8299 = vmatpush3.bf16.msra.mxu0 %v9190_v7 }
 0x12d   :  { %8300 = vmatprep.subr.bf16.mxu0 %v9193_v10  ;;  %v9239_v10 = vld [vmem:[#allocation2 + $0x9e0] sm:$0xff]  }
 0x12e   :  { %8321 = vmatpush3.bf16.msra.mxu1 %v9192_v9 }
 0x12f   :  { %8322 = vmatprep.subr.bf16.mxu1 %v9195_v12 }
 0x130   :  { %8301 = vmatpush3.bf16.msra.mxu0 %v9194_v11 }
 0x131   :  { %8302 = vmatprep.subr.bf16.mxu0 %v9197_v14 }
 0x132   :  { %8323 = vmatpush3.bf16.msra.mxu1 %v9196_v13  ;;  %v9240_v13 = vld [vmem:[#allocation2 + $0x9a0] sm:$0xff]  }
 0x133   :  { %8324 = vmatprep.subr.bf16.mxu1 %v9199_v16  ;;  %v9241_v16 = vld [vmem:[#allocation2 + $0x968] sm:$0xff]  }
 0x134   :  { %8303 = vmatpush3.bf16.msra.mxu0 %v9198_v15 }
 0x135   :  { %8304 = vmatprep.subr.bf16.mxu0 %v9201_v18  ;;  %v9242_v18 = vld [vmem:[#allocation2 + $0x928] sm:$0xff]  }
 0x136   :  { %8325 = vmatpush3.bf16.msra.mxu1 %v9200_v17 }
 0x137   :  { %8326 = vmatprep.subr.bf16.mxu1 %v9203_v22 }
 0x138   :  { %8305 = vmatpush3.bf16.msra.mxu0 %v9202_v20 }
 0x139   :  { %8306 = vmatprep.subr.bf16.mxu0 %v9205_v29  ;;  %v9247_v29 = vld [vmem:[#allocation2 + $0x9f0] sm:$0xff]  }
 0x13a   :  { %v8004_v19 = vpop.f32.mrb[4].mxu0  ;;  %8327 = vmatpush3.bf16.msra.mxu1 %v9204_v26 }
 0x13b   :  { %v8005_v21 = vpop.f32.mrb[5].mxu0  ;;  %8328 = vmatprep.subr.bf16.mxu1 %v9207_v34  ;;  %v79_v34 = vld [vmem:[%s9931_s0 + $0x90] sm:$0xff] }
 0x13c   :  { %v8006_v23 = vadd.f32 %v8005_v21, %v8004_v19  ;;  %v8007_v25 = vpop.f32.mrb[6].mxu0  ;;  %v8026_v27 = vpop.f32.mrb[4].mxu1  ;;  %8307 = vmatpush3.bf16.msra.mxu0 %v9206_v31  ;;  %v9243_v21 = vld [vmem:[#allocation2 + $0x9e8] sm:$0xff]   ;;  %v9249_v31 = vld [vmem:[#allocation2 + $0x978] sm:$0xff]  }
 0x13d   :  { %v8008_v30 = vpop.f32.mrb[7].mxu0  ;;  %v8027_v32 = vpop.f32.mrb[5].mxu1  ;;  %8308 = vmatprep.subr.bf16.mxu0 %v9209_v40  ;;  %v80_v40 = vld [vmem:[%s9931_s0 + $0x98] sm:$0xff] }
 0x13e   :  { %v5553_v28 = vadd.f32 %v8006_v23, %v9780_v53  ;;  %v8028_v33 = vadd.f32 %v8027_v32, %v8026_v27  ;;  %v8029_v35 = vpop.f32.mrb[6].mxu1  ;;  %8329 = vmatpush3.bf16.msra.mxu1 %v9208_v36  ;;  %v7251_v53 = vcombine.low %v78_v52, %v78_v52  ;;  %v9244_v23 = vld [vmem:[#allocation2 + $0x9a8] sm:$0xff]   ;;  %v9245_v27 = vld [vmem:[#allocation2 + $0x970] sm:$0xff]   ;;  %v9250_v32 = vld [vmem:[#allocation2 + $0x938] sm:$0xff]   ;;  %v7254_v36 = vcombine.high %v79_v34, %v79_v34 }
 0x13f   :  { %v8030_v37 = vpop.f32.mrb[7].mxu1  ;;  %8330 = vmatprep.subr.bf16.mxu1 %v9211_v42  ;;  %v9248_v30 = vld [vmem:[#allocation2 + $0x9b0] sm:$0xff]   ;;  %v7253_v35 = vcombine.low %v79_v34, %v79_v34  ;;  %v7256_v42 = vcombine.high %v80_v40, %v80_v40  ;;  %v9298_v34 = vld [vmem:[#allocation2 + $0xb08] sm:$0xff]  }
 0x140   :  { %v9789_v39 = vadd.f32 %v8028_v33, %v5553_v28  ;;  %8309 = vmatpush3.bf16.msra.mxu0 %v9210_v41  ;;  %v9246_v28 = vld [vmem:[#allocation2 + $0x930] sm:$0xff]   ;;  %v9251_v33 = vld [vmem:[#allocation2 + $0x9f8] sm:$0xff]   ;;  %v7255_v41 = vcombine.low %v80_v40, %v80_v40 }
 0x141   :  { %8310 = vmatprep.subr.bf16.mxu0 %v9213_v44  ;;  %v9254_v37 = vld [vmem:[#allocation2 + $0x9b8] sm:$0xff]   ;;  %v9259_v44 = vld [vmem:[#allocation2 + $0xac0] sm:$0xff]   ;;  %v9267_v52 = vld [vmem:[#allocation2 + $0xad0] sm:$0xff]  }
 0x142   :  { %8331 = vmatpush3.bf16.msra.mxu1 %v9212_v43  ;;  %v9258_v43 = vld [vmem:[#allocation2 + $0xa00] sm:$0xff]   ;;  %v9303_v40 = vld [vmem:[#allocation2 + $0xbd0] sm:$0xff]  }
 0x143   :  { %8332 = vmatprep.subr.bf16.mxu1 %v9215_v46  ;;  %v9261_v46 = vld [vmem:[#allocation2 + $0xa48] sm:$0xff]  }
 0x144   :  { %8311 = vmatpush3.bf16.msra.mxu0 %v9214_v45  ;;  %v9260_v45 = vld [vmem:[#allocation2 + $0xa80] sm:$0xff]  }
 0x145   :  { %8340 = vmatprep.subr.bf16.mxu0 %v9219_v51  ;;  %v9266_v51 = vld [vmem:[#allocation2 + $0xa10] sm:$0xff]  }
 0x146   :  { %8333 = vmatpush3.bf16.msra.mxu1 %v9218_v50  ;;  %v9265_v50 = vld [vmem:[#allocation2 + $0xa50] sm:$0xff]  }
 0x147   :  { %6111 = vmatmul.mubr.bf16.vlgmr.msra.gmra.mrb[32].mxu0 %v7249_v48  ;;  %8362 = vmatprep.subr.bf16.mxu1 %v9223_v56  ;;  %v9263_v48 = vld [vmem:[#allocation2 + $0xac8] sm:$0xff]   ;;  %v9271_v56 = vld [vmem:[#allocation2 + $0xad8] sm:$0xff]  }
 0x148   :  { %8341 = vmatpush3.bf16.msra.mxu0 %v9222_v55  ;;  %6190 = vmatprep.mubr.bf16.mxu0 %v7254_v36  ;;  %v9270_v55 = vld [vmem:[#allocation2 + $0xa18] sm:$0xff]   ;;  %v9300_v36 = vld [vmem:[#allocation2 + $0xb88] sm:$0xff]  }
 0x149   :  { %6151 = vmatmul.mubr.bf16.vlgmr.msra.gmra.mrb[32].mxu1 %v7251_v53  ;;  %8342 = vmatprep.subr.bf16.mxu0 %v9225_v58  ;;  %v9268_v53 = vld [vmem:[#allocation2 + $0xa90] sm:$0xff]   ;;  %v9273_v58 = vld [vmem:[#allocation2 + $0xa60] sm:$0xff]  }
 0x14a   :  { %8363 = vmatpush3.bf16.msra.mxu1 %v9224_v57  ;;  %6230 = vmatprep.mubr.bf16.mxu1 %v7256_v42  ;;  %v9272_v57 = vld [vmem:[#allocation2 + $0xa98] sm:$0xff]  }
 0x14b   :  { %8364 = vmatprep.subr.bf16.mxu1 %v9227_v60  ;;  %v9305_v42 = vld [vmem:[#allocation2 + $0xb58] sm:$0xff]  }
 0x14c   :  { %8343 = vmatpush3.bf16.msra.mxu0 %v9226_v59  ;;  %v9274_v59 = vld [vmem:[#allocation2 + $0xa20] sm:$0xff]  }
 0x14d   :  { %8344 = vmatprep.subr.bf16.mxu0 %v9229_v62 }
 0x14e   :  { %8365 = vmatpush3.bf16.msra.mxu1 %v9228_v61  ;;  %v9275_v61 = vld [vmem:[#allocation2 + $0xae0] sm:$0xff]  }
 0x14f   :  { %8366 = vmatprep.subr.bf16.mxu1 %v9231_v0 }
 0x150   :  { %8345 = vmatpush3.bf16.msra.mxu0 %v9230_v63  ;;  %v9276_v63 = vld [vmem:[#allocation2 + $0xaa0] sm:$0xff]  }
 0x151   :  { %8346 = vmatprep.subr.bf16.mxu0 %v9233_v2  ;;  %v9277_v2 = vld [vmem:[#allocation2 + $0xa68] sm:$0xff]  }
 0x152   :  { %8367 = vmatpush3.bf16.msra.mxu1 %v9232_v1 }
 0x153   :  { %8368 = vmatprep.subr.bf16.mxu1 %v9235_v4 }
 0x154   :  { %8347 = vmatpush3.bf16.msra.mxu0 %v9234_v3 }
 0x155   :  { %8348 = vmatprep.subr.bf16.mxu0 %v9237_v6 }
 0x156   :  { %8369 = vmatpush3.bf16.msra.mxu1 %v9236_v5  ;;  %v9278_v5 = vld [vmem:[#allocation2 + $0xa28] sm:$0xff]  }
 0x157   :  { %8370 = vmatprep.subr.bf16.mxu1 %v9239_v10  ;;  %v9280_v10 = vld [vmem:[#allocation2 + $0xaa8] sm:$0xff]  }
 0x158   :  { %8349 = vmatpush3.bf16.msra.mxu0 %v9238_v8  ;;  %v9279_v8 = vld [vmem:[#allocation2 + $0xae8] sm:$0xff]  }
 0x159   :  { %8350 = vmatprep.subr.bf16.mxu0 %v9241_v16  ;;  %v9283_v16 = vld [vmem:[#allocation2 + $0xaf0] sm:$0xff]  }
 0x15a   :  { %v8048_v7 = vpop.f32.mrb[8].mxu0  ;;  %8371 = vmatpush3.bf16.msra.mxu1 %v9240_v13 }
 0x15b   :  { %v8049_v9 = vpop.f32.mrb[9].mxu0  ;;  %8372 = vmatprep.subr.bf16.mxu1 %v9243_v21  ;;  %v81_v21 = vld [vmem:[%s9931_s0 + $0xa0] sm:$0xff] }
 0x15c   :  { %v8050_v11 = vadd.f32 %v8049_v9, %v8048_v7  ;;  %v8051_v12 = vpop.f32.mrb[10].mxu0  ;;  %v8070_v14 = vpop.f32.mrb[8].mxu1  ;;  %8351 = vmatpush3.bf16.msra.mxu0 %v9242_v18  ;;  %v9285_v18 = vld [vmem:[#allocation2 + $0xa78] sm:$0xff]  }
 0x15d   :  { %v8052_v17 = vpop.f32.mrb[11].mxu0  ;;  %v8071_v19 = vpop.f32.mrb[9].mxu1  ;;  %8352 = vmatprep.subr.bf16.mxu0 %v9245_v27  ;;  %v9281_v12 = vld [vmem:[#allocation2 + $0xa70] sm:$0xff]   ;;  %v82_v27 = vld [vmem:[%s9931_s0 + $0xa8] sm:$0xff] }
 0x15e   :  { %v5633_v15 = vadd.f32 %v8050_v11, %v9789_v39  ;;  %v8072_v20 = vadd.f32 %v8071_v19, %v8070_v14  ;;  %v8073_v22 = vpop.f32.mrb[10].mxu1  ;;  %8373 = vmatpush3.bf16.msra.mxu1 %v9244_v23  ;;  %v9255_v39 = vld [vmem:[#allocation2 + $0xa40] sm:$0xff]   ;;  %v9284_v17 = vld [vmem:[#allocation2 + $0xab0] sm:$0xff]   ;;  %v9286_v19 = vld [vmem:[#allocation2 + $0xa38] sm:$0xff]   ;;  %v7258_v23 = vcombine.high %v81_v21, %v81_v21 }
 0x15f   :  { %v8074_v25 = vpop.f32.mrb[11].mxu1  ;;  %8374 = vmatprep.subr.bf16.mxu1 %v9247_v29  ;;  %v7257_v22 = vcombine.low %v81_v21, %v81_v21  ;;  %v7260_v29 = vcombine.high %v82_v27, %v82_v27  ;;  %v9334_v21 = vld [vmem:[#allocation2 + $0xc08] sm:$0xff]  }
 0x160   :  { %v9798_v26 = vadd.f32 %v8072_v20, %v5633_v15  ;;  %8353 = vmatpush3.bf16.msra.mxu0 %v9246_v28  ;;  %v9282_v15 = vld [vmem:[#allocation2 + $0xa30] sm:$0xff]   ;;  %v9287_v20 = vld [vmem:[#allocation2 + $0xaf8] sm:$0xff]   ;;  %v7259_v28 = vcombine.low %v82_v27, %v82_v27 }
 0x161   :  { %8354 = vmatprep.subr.bf16.mxu0 %v9249_v31  ;;  %v9290_v25 = vld [vmem:[#allocation2 + $0xab8] sm:$0xff]   ;;  %v9295_v31 = vld [vmem:[#allocation2 + $0xbc0] sm:$0xff]   ;;  %v9339_v27 = vld [vmem:[#allocation2 + $0xcd0] sm:$0xff]  }
 0x162   :  { %8375 = vmatpush3.bf16.msra.mxu1 %v9248_v30  ;;  %v9294_v30 = vld [vmem:[#allocation2 + $0xb00] sm:$0xff]  }
 0x163   :  { %8376 = vmatprep.subr.bf16.mxu1 %v9251_v33  ;;  %v9297_v33 = vld [vmem:[#allocation2 + $0xb48] sm:$0xff]  }
 0x164   :  { %8355 = vmatpush3.bf16.msra.mxu0 %v9250_v32  ;;  %v9296_v32 = vld [vmem:[#allocation2 + $0xb80] sm:$0xff]  }
 0x165   :  { %8384 = vmatprep.subr.bf16.mxu0 %v9255_v39  ;;  %v9302_v39 = vld [vmem:[#allocation2 + $0xb10] sm:$0xff]  }
 0x166   :  { %8377 = vmatpush3.bf16.msra.mxu1 %v9254_v37  ;;  %v9301_v37 = vld [vmem:[#allocation2 + $0xb50] sm:$0xff]  }
 0x167   :  { %6191 = vmatmul.mubr.bf16.vlgmr.msra.gmra.mrb[36].mxu0 %v7253_v35  ;;  %8406 = vmatprep.subr.bf16.mxu1 %v9259_v44  ;;  %v9299_v35 = vld [vmem:[#allocation2 + $0xbc8] sm:$0xff]   ;;  %v9307_v44 = vld [vmem:[#allocation2 + $0xbd8] sm:$0xff]  }
 0x168   :  { %8385 = vmatpush3.bf16.msra.mxu0 %v9258_v43  ;;  %6270 = vmatprep.mubr.bf16.mxu0 %v7258_v23  ;;  %v9306_v43 = vld [vmem:[#allocation2 + $0xb18] sm:$0xff]   ;;  %v9336_v23 = vld [vmem:[#allocation2 + $0xc88] sm:$0xff]  }
 0x169   :  { %6231 = vmatmul.mubr.bf16.vlgmr.msra.gmra.mrb[36].mxu1 %v7255_v41  ;;  %8386 = vmatprep.subr.bf16.mxu0 %v9261_v46  ;;  %v9304_v41 = vld [vmem:[#allocation2 + $0xb90] sm:$0xff]   ;;  %v9309_v46 = vld [vmem:[#allocation2 + $0xb60] sm:$0xff]  }
 0x16a   :  { %8407 = vmatpush3.bf16.msra.mxu1 %v9260_v45  ;;  %6310 = vmatprep.mubr.bf16.mxu1 %v7260_v29  ;;  %v9308_v45 = vld [vmem:[#allocation2 + $0xb98] sm:$0xff]  }
 0x16b   :  { %8408 = vmatprep.subr.bf16.mxu1 %v9263_v48  ;;  %v9310_v48 = vld [vmem:[#allocation2 + $0xb20] sm:$0xff]   ;;  %v9341_v29 = vld [vmem:[#allocation2 + $0xc58] sm:$0xff]  }
 0x16c   :  { %8387 = vmatpush3.bf16.msra.mxu0 %v9262_v47 }
 0x16d   :  { %8388 = vmatprep.subr.bf16.mxu0 %v9265_v50  ;;  %v9311_v50 = vld [vmem:[#allocation2 + $0xbe0] sm:$0xff]  }
 0x16e   :  { %8409 = vmatpush3.bf16.msra.mxu1 %v9264_v49 }
 0x16f   :  { %8410 = vmatprep.subr.bf16.mxu1 %v9267_v52 }
 0x170   :  { %8389 = vmatpush3.bf16.msra.mxu0 %v9266_v51 }
 0x171   :  { %8390 = vmatprep.subr.bf16.mxu0 %v9269_v54 }
 0x172   :  { %8411 = vmatpush3.bf16.msra.mxu1 %v9268_v53  ;;  %v9312_v53 = vld [vmem:[#allocation2 + $0xba0] sm:$0xff]  }
 0x173   :  { %8412 = vmatprep.subr.bf16.mxu1 %v9271_v56  ;;  %v9313_v56 = vld [vmem:[#allocation2 + $0xb68] sm:$0xff]  }
 0x174   :  { %8391 = vmatpush3.bf16.msra.mxu0 %v9270_v55 }
 0x175   :  { %8392 = vmatprep.subr.bf16.mxu0 %v9273_v58  ;;  %v9314_v58 = vld [vmem:[#allocation2 + $0xb28] sm:$0xff]  }
 0x176   :  { %8413 = vmatpush3.bf16.msra.mxu1 %v9272_v57 }
 0x177   :  { %8414 = vmatprep.subr.bf16.mxu1 %v9275_v61  ;;  %v9315_v61 = vld [vmem:[#allocation2 + $0xbe8] sm:$0xff]  }
 0x178   :  { %8393 = vmatpush3.bf16.msra.mxu0 %v9274_v59 }
 0x179   :  { %8394 = vmatprep.subr.bf16.mxu0 %v9277_v2  ;;  %v9317_v2 = vld [vmem:[#allocation2 + $0xb70] sm:$0xff]  }
 0x17a   :  { %v8092_v60 = vpop.f32.mrb[12].mxu0  ;;  %8415 = vmatpush3.bf16.msra.mxu1 %v9276_v63  ;;  %v9316_v63 = vld [vmem:[#allocation2 + $0xba8] sm:$0xff]  }
 0x17b   :  { %v8093_v62 = vpop.f32.mrb[13].mxu0  ;;  %8416 = vmatprep.subr.bf16.mxu1 %v9279_v8  ;;  %v9323_v8 = vld [vmem:[#allocation2 + $0xbf8] sm:$0xff]  }
 0x17c   :  { %v8094_v0 = vadd.f32 %v8093_v62, %v8092_v60  ;;  %v8095_v1 = vpop.f32.mrb[14].mxu0  ;;  %v8114_v3 = vpop.f32.mrb[12].mxu1  ;;  %8395 = vmatpush3.bf16.msra.mxu0 %v9278_v5  ;;  %v9320_v5 = vld [vmem:[#allocation2 + $0xbb0] sm:$0xff]  }
 0x17d   :  { %v8096_v6 = vpop.f32.mrb[15].mxu0  ;;  %v8115_v7 = vpop.f32.mrb[13].mxu1  ;;  %8396 = vmatprep.subr.bf16.mxu0 %v9281_v12  ;;  %v9326_v12 = vld [vmem:[#allocation2 + $0xbb8] sm:$0xff]  }
 0x17e   :  { %v5713_v4 = vadd.f32 %v8094_v0, %v9798_v26  ;;  %v8116_v9 = vadd.f32 %v8115_v7, %v8114_v3  ;;  %v8117_v11 = vpop.f32.mrb[14].mxu1  ;;  %8417 = vmatpush3.bf16.msra.mxu1 %v9280_v10  ;;  %v9291_v26 = vld [vmem:[#allocation2 + $0xb40] sm:$0xff]   ;;  %v9318_v3 = vld [vmem:[#allocation2 + $0xb30] sm:$0xff]   ;;  %v9321_v6 = vld [vmem:[#allocation2 + $0xb78] sm:$0xff]  }
 0x17f   :  { %v8118_v13 = vpop.f32.mrb[15].mxu1  ;;  %8418 = vmatprep.subr.bf16.mxu1 %v9283_v16  ;;  %v9322_v7 = vld [vmem:[#allocation2 + $0xb38] sm:$0xff]  }
 0x180   :  { %v9807_v14 = vadd.f32 %v8116_v9, %v5713_v4  ;;  %8397 = vmatpush3.bf16.msra.mxu0 %v9282_v15  ;;  %v9319_v4 = vld [vmem:[#allocation2 + $0xbf0] sm:$0xff]   ;;  %v9327_v13 = vld [vmem:[#allocation2 + $0xc40] sm:$0xff]  }
 0x181   :  { %8398 = vmatprep.subr.bf16.mxu0 %v9285_v18  ;;  %v83_v9 = vld [vmem:[%s9931_s0 + $0xb0] sm:$0xff]  ;;  %v9331_v18 = vld [vmem:[#allocation2 + $0xcc0] sm:$0xff]  }
 0x182   :  { %8419 = vmatpush3.bf16.msra.mxu1 %v9284_v17  ;;  %v7261_v10 = vcombine.low %v83_v9, %v83_v9  ;;  %v7262_v11 = vcombine.high %v83_v9, %v83_v9  ;;  %v9330_v17 = vld [vmem:[#allocation2 + $0xc00] sm:$0xff]   ;;  %v9370_v9 = vld [vmem:[#allocation2 + $0xd08] sm:$0xff]  }
 0x183   :  { %8420 = vmatprep.subr.bf16.mxu1 %v9287_v20  ;;  %v9333_v20 = vld [vmem:[#allocation2 + $0xc48] sm:$0xff]  }
 0x184   :  { %8399 = vmatpush3.bf16.msra.mxu0 %v9286_v19  ;;  %v9332_v19 = vld [vmem:[#allocation2 + $0xc80] sm:$0xff]  }
 0x185   :  { %8428 = vmatprep.subr.bf16.mxu0 %v9291_v26  ;;  %v9338_v26 = vld [vmem:[#allocation2 + $0xc10] sm:$0xff]  }
 0x186   :  { %8421 = vmatpush3.bf16.msra.mxu1 %v9290_v25  ;;  %v9337_v25 = vld [vmem:[#allocation2 + $0xc50] sm:$0xff]  }
 0x187   :  { %6271 = vmatmul.mubr.bf16.vlgmr.msra.gmra.mrb[40].mxu0 %v7257_v22  ;;  %8450 = vmatprep.subr.bf16.mxu1 %v9295_v31  ;;  %v9335_v22 = vld [vmem:[#allocation2 + $0xcc8] sm:$0xff]   ;;  %v9343_v31 = vld [vmem:[#allocation2 + $0xcd8] sm:$0xff]  }
 0x188   :  { %8429 = vmatpush3.bf16.msra.mxu0 %v9294_v30  ;;  %6350 = vmatprep.mubr.bf16.mxu0 %v7262_v11  ;;  %v9342_v30 = vld [vmem:[#allocation2 + $0xc18] sm:$0xff]   ;;  %v9372_v11 = vld [vmem:[#allocation2 + $0xd88] sm:$0xff]  }
 0x189   :  { %6311 = vmatmul.mubr.bf16.vlgmr.msra.gmra.mrb[40].mxu1 %v7259_v28  ;;  %8430 = vmatprep.subr.bf16.mxu0 %v9297_v33  ;;  %v9340_v28 = vld [vmem:[#allocation2 + $0xc90] sm:$0xff]   ;;  %v9345_v33 = vld [vmem:[#allocation2 + $0xc60] sm:$0xff]  }
 0x18a   :  { %8451 = vmatpush3.bf16.msra.mxu1 %v9296_v32  ;;  %v9344_v32 = vld [vmem:[#allocation2 + $0xc98] sm:$0xff]  }
 0x18b   :  { %8452 = vmatprep.subr.bf16.mxu1 %v9299_v35  ;;  %v9346_v35 = vld [vmem:[#allocation2 + $0xc20] sm:$0xff]  }
 0x18c   :  { %8431 = vmatpush3.bf16.msra.mxu0 %v9298_v34 }
 0x18d   :  { %8432 = vmatprep.subr.bf16.mxu0 %v9301_v37  ;;  %v9347_v37 = vld [vmem:[#allocation2 + $0xce0] sm:$0xff]  }
 0x18e   :  { %8453 = vmatpush3.bf16.msra.mxu1 %v9300_v36 }
 0x18f   :  { %8454 = vmatprep.subr.bf16.mxu1 %v9303_v40 }
 0x190   :  { %8433 = vmatpush3.bf16.msra.mxu0 %v9302_v39 }
 0x191   :  { %8434 = vmatprep.subr.bf16.mxu0 %v9305_v42 }
 0x192   :  { %8455 = vmatpush3.bf16.msra.mxu1 %v9304_v41  ;;  %v9348_v41 = vld [vmem:[#allocation2 + $0xca0] sm:$0xff]  }
 0x193   :  { %8456 = vmatprep.subr.bf16.mxu1 %v9307_v44  ;;  %v9349_v44 = vld [vmem:[#allocation2 + $0xc68] sm:$0xff]  }
 0x194   :  { %8435 = vmatpush3.bf16.msra.mxu0 %v9306_v43 }
 0x195   :  { %8436 = vmatprep.subr.bf16.mxu0 %v9309_v46  ;;  %v9350_v46 = vld [vmem:[#allocation2 + $0xc28] sm:$0xff]  }
 0x196   :  { %8457 = vmatpush3.bf16.msra.mxu1 %v9308_v45 }
 0x197   :  { %8458 = vmatprep.subr.bf16.mxu1 %v9311_v50 }
 0x198   :  { %8437 = vmatpush3.bf16.msra.mxu0 %v9310_v48 }
 0x199   :  { %8438 = vmatprep.subr.bf16.mxu0 %v9313_v56  ;;  %v9355_v56 = vld [vmem:[#allocation2 + $0xcf0] sm:$0xff]  }
 0x19a   :  { %v8136_v47 = vpop.f32.mrb[16].mxu0  ;;  %8459 = vmatpush3.bf16.msra.mxu1 %v9312_v53 }
 0x19b   :  { %v8137_v49 = vpop.f32.mrb[17].mxu0  ;;  %8460 = vmatprep.subr.bf16.mxu1 %v9315_v61  ;;  %v85_v61 = vld [vmem:[%s9931_s0 + $0xc0] sm:$0xff] }
 0x19c   :  { %v8138_v51 = vadd.f32 %v8137_v49, %v8136_v47  ;;  %v8139_v52 = vpop.f32.mrb[18].mxu0  ;;  %v8158_v54 = vpop.f32.mrb[16].mxu1  ;;  %8439 = vmatpush3.bf16.msra.mxu0 %v9314_v58  ;;  %v9351_v49 = vld [vmem:[#allocation2 + $0xce8] sm:$0xff]   ;;  %v9357_v58 = vld [vmem:[#allocation2 + $0xc78] sm:$0xff]  }
 0x19d   :  { %v8140_v57 = vpop.f32.mrb[19].mxu0  ;;  %v8159_v59 = vpop.f32.mrb[17].mxu1  ;;  %8440 = vmatprep.subr.bf16.mxu0 %v9317_v2  ;;  %v86_v2 = vld [vmem:[%s9931_s0 + $0xc8] sm:$0xff] }
 0x19e   :  { %v5793_v55 = vadd.f32 %v8138_v51, %v9807_v14  ;;  %v8160_v60 = vadd.f32 %v8159_v59, %v8158_v54  ;;  %v8161_v62 = vpop.f32.mrb[18].mxu1  ;;  %8461 = vmatpush3.bf16.msra.mxu1 %v9316_v63  ;;  %v84_v14 = vld [vmem:[%s9931_s0 + $0xb8] sm:$0xff]  ;;  %v9352_v51 = vld [vmem:[#allocation2 + $0xca8] sm:$0xff]   ;;  %v9353_v54 = vld [vmem:[#allocation2 + $0xc70] sm:$0xff]   ;;  %v7266_v63 = vcombine.high %v85_v61, %v85_v61 }
 0x19f   :  { %v8162_v0 = vpop.f32.mrb[19].mxu1  ;;  %8462 = vmatprep.subr.bf16.mxu1 %v9319_v4  ;;  %v7263_v15 = vcombine.low %v84_v14, %v84_v14  ;;  %v7264_v16 = vcombine.high %v84_v14, %v84_v14  ;;  %v9356_v57 = vld [vmem:[#allocation2 + $0xcb0] sm:$0xff]   ;;  %v9358_v59 = vld [vmem:[#allocation2 + $0xc38] sm:$0xff]   ;;  %v7265_v62 = vcombine.low %v85_v61, %v85_v61  ;;  %v7268_v4 = vcombine.high %v86_v2, %v86_v2  ;;  %v9406_v61 = vld [vmem:[#allocation2 + $0xe08] sm:$0xff]  }
 0x1a0   :  { %v9816_v1 = vadd.f32 %v8160_v60, %v5793_v55  ;;  %8441 = vmatpush3.bf16.msra.mxu0 %v9318_v3  ;;  %v9354_v55 = vld [vmem:[#allocation2 + $0xc30] sm:$0xff]   ;;  %v9359_v60 = vld [vmem:[#allocation2 + $0xcf8] sm:$0xff]   ;;  %v7267_v3 = vcombine.low %v86_v2, %v86_v2 }
 0x1a1   :  { %8442 = vmatprep.subr.bf16.mxu0 %v9321_v6  ;;  %6390 = vmatprep.mubr.bf16.mxu1 %v7264_v16  ;;  %v9362_v0 = vld [vmem:[#allocation2 + $0xcb8] sm:$0xff]   ;;  %v9367_v6 = vld [vmem:[#allocation2 + $0xdc0] sm:$0xff]   ;;  %v9375_v14 = vld [vmem:[#allocation2 + $0xdd0] sm:$0xff]  }
 0x1a2   :  { %8463 = vmatpush3.bf16.msra.mxu1 %v9320_v5  ;;  %v9366_v5 = vld [vmem:[#allocation2 + $0xd00] sm:$0xff]   ;;  %v9377_v16 = vld [vmem:[#allocation2 + $0xd58] sm:$0xff]   ;;  %v9411_v2 = vld [vmem:[#allocation2 + $0xed0] sm:$0xff]  }
 0x1a3   :  { %8464 = vmatprep.subr.bf16.mxu1 %v9323_v8  ;;  %v9369_v8 = vld [vmem:[#allocation2 + $0xd48] sm:$0xff]  }
 0x1a4   :  { %8443 = vmatpush3.bf16.msra.mxu0 %v9322_v7  ;;  %v9368_v7 = vld [vmem:[#allocation2 + $0xd80] sm:$0xff]  }
 0x1a5   :  { %8472 = vmatprep.subr.bf16.mxu0 %v9327_v13  ;;  %v9374_v13 = vld [vmem:[#allocation2 + $0xd10] sm:$0xff]  }
 0x1a6   :  { %8465 = vmatpush3.bf16.msra.mxu1 %v9326_v12  ;;  %v9373_v12 = vld [vmem:[#allocation2 + $0xd50] sm:$0xff]  }
 0x1a7   :  { %6351 = vmatmul.mubr.bf16.vlgmr.msra.gmra.mrb[44].mxu0 %v7261_v10  ;;  %8494 = vmatprep.subr.bf16.mxu1 %v9331_v18  ;;  %v9371_v10 = vld [vmem:[#allocation2 + $0xdc8] sm:$0xff]   ;;  %v9379_v18 = vld [vmem:[#allocation2 + $0xdd8] sm:$0xff]  }
 0x1a8   :  { %8473 = vmatpush3.bf16.msra.mxu0 %v9330_v17  ;;  %6430 = vmatprep.mubr.bf16.mxu0 %v7266_v63  ;;  %v9378_v17 = vld [vmem:[#allocation2 + $0xd18] sm:$0xff]   ;;  %v9408_v63 = vld [vmem:[#allocation2 + $0xe88] sm:$0xff]  }
 0x1a9   :  { %6391 = vmatmul.mubr.bf16.vlgmr.msra.gmra.mrb[44].mxu1 %v7263_v15  ;;  %8474 = vmatprep.subr.bf16.mxu0 %v9333_v20  ;;  %v9376_v15 = vld [vmem:[#allocation2 + $0xd90] sm:$0xff]   ;;  %v9381_v20 = vld [vmem:[#allocation2 + $0xd60] sm:$0xff]  }
 0x1aa   :  { %8495 = vmatpush3.bf16.msra.mxu1 %v9332_v19  ;;  %6470 = vmatprep.mubr.bf16.mxu1 %v7268_v4  ;;  %v9380_v19 = vld [vmem:[#allocation2 + $0xd98] sm:$0xff]  }
 0x1ab   :  { %8496 = vmatprep.subr.bf16.mxu1 %v9335_v22  ;;  %v9413_v4 = vld [vmem:[#allocation2 + $0xe58] sm:$0xff]  }
 0x1ac   :  { %8475 = vmatpush3.bf16.msra.mxu0 %v9334_v21  ;;  %v9382_v21 = vld [vmem:[#allocation2 + $0xd20] sm:$0xff]  }
 0x1ad   :  { %8476 = vmatprep.subr.bf16.mxu0 %v9337_v25 }
 0x1ae   :  { %8497 = vmatpush3.bf16.msra.mxu1 %v9336_v23  ;;  %v9383_v23 = vld [vmem:[#allocation2 + $0xde0] sm:$0xff]  }
 0x1af   :  { %8498 = vmatprep.subr.bf16.mxu1 %v9339_v27 }
 0x1b0   :  { %8477 = vmatpush3.bf16.msra.mxu0 %v9338_v26  ;;  %v9384_v26 = vld [vmem:[#allocation2 + $0xda0] sm:$0xff]  }
 0x1b1   :  { %8478 = vmatprep.subr.bf16.mxu0 %v9341_v29  ;;  %v9385_v29 = vld [vmem:[#allocation2 + $0xd68] sm:$0xff]  }
 0x1b2   :  { %8499 = vmatpush3.bf16.msra.mxu1 %v9340_v28 }
 0x1b3   :  { %8500 = vmatprep.subr.bf16.mxu1 %v9343_v31 }
 0x1b4   :  { %8479 = vmatpush3.bf16.msra.mxu0 %v9342_v30 }
 0x1b5   :  { %8480 = vmatprep.subr.bf16.mxu0 %v9345_v33 }
 0x1b6   :  { %8501 = vmatpush3.bf16.msra.mxu1 %v9344_v32  ;;  %v9386_v32 = vld [vmem:[#allocation2 + $0xd28] sm:$0xff]  }
 0x1b7   :  { %8502 = vmatprep.subr.bf16.mxu1 %v9347_v37  ;;  %v9388_v37 = vld [vmem:[#allocation2 + $0xda8] sm:$0xff]  }
 0x1b8   :  { %8481 = vmatpush3.bf16.msra.mxu0 %v9346_v35  ;;  %v9387_v35 = vld [vmem:[#allocation2 + $0xde8] sm:$0xff]  }
 0x1b9   :  { %8482 = vmatprep.subr.bf16.mxu0 %v9349_v44  ;;  %v9391_v44 = vld [vmem:[#allocation2 + $0xdf0] sm:$0xff]  }
 0x1ba   :  { %v8180_v34 = vpop.f32.mrb[20].mxu0  ;;  %8503 = vmatpush3.bf16.msra.mxu1 %v9348_v41 }
 0x1bb   :  { %v8181_v36 = vpop.f32.mrb[21].mxu0  ;;  %8504 = vmatprep.subr.bf16.mxu1 %v9351_v49  ;;  %v87_v49 = vld [vmem:[%s9931_s0 + $0xd0] sm:$0xff] }
 0x1bc   :  { %v8182_v39 = vadd.f32 %v8181_v36, %v8180_v34  ;;  %v8183_v40 = vpop.f32.mrb[22].mxu0  ;;  %v8202_v42 = vpop.f32.mrb[20].mxu1  ;;  %8483 = vmatpush3.bf16.msra.mxu0 %v9350_v46  ;;  %v9393_v46 = vld [vmem:[#allocation2 + $0xd78] sm:$0xff]  }
 0x1bd   :  { %v8184_v45 = vpop.f32.mrb[23].mxu0  ;;  %v8203_v47 = vpop.f32.mrb[21].mxu1  ;;  %8484 = vmatprep.subr.bf16.mxu0 %v9353_v54  ;;  %v9389_v40 = vld [vmem:[#allocation2 + $0xd70] sm:$0xff]   ;;  %v88_v54 = vld [vmem:[%s9931_s0 + $0xd8] sm:$0xff] }
 0x1be   :  { %v5873_v43 = vadd.f32 %v8182_v39, %v9816_v1  ;;  %v8204_v48 = vadd.f32 %v8203_v47, %v8202_v42  ;;  %v8205_v50 = vpop.f32.mrb[22].mxu1  ;;  %8505 = vmatpush3.bf16.msra.mxu1 %v9352_v51  ;;  %v9363_v1 = vld [vmem:[#allocation2 + $0xd40] sm:$0xff]   ;;  %v9392_v45 = vld [vmem:[#allocation2 + $0xdb0] sm:$0xff]   ;;  %v9394_v47 = vld [vmem:[#allocation2 + $0xd38] sm:$0xff]   ;;  %v7270_v51 = vcombine.high %v87_v49, %v87_v49 }
 0x1bf   :  { %v8206_v52 = vpop.f32.mrb[23].mxu1  ;;  %8506 = vmatprep.subr.bf16.mxu1 %v9355_v56  ;;  %v7269_v50 = vcombine.low %v87_v49, %v87_v49  ;;  %v7272_v56 = vcombine.high %v88_v54, %v88_v54  ;;  %v9442_v49 = vld [vmem:[#allocation2 + $0xf08] sm:$0xff]  }
 0x1c0   :  { %v9825_v53 = vadd.f32 %v8204_v48, %v5873_v43  ;;  %8485 = vmatpush3.bf16.msra.mxu0 %v9354_v55  ;;  %v9390_v43 = vld [vmem:[#allocation2 + $0xd30] sm:$0xff]   ;;  %v9395_v48 = vld [vmem:[#allocation2 + $0xdf8] sm:$0xff]   ;;  %v7271_v55 = vcombine.low %v88_v54, %v88_v54 }
 0x1c1   :  { %8486 = vmatprep.subr.bf16.mxu0 %v9357_v58  ;;  %v9398_v52 = vld [vmem:[#allocation2 + $0xdb8] sm:$0xff]   ;;  %v9403_v58 = vld [vmem:[#allocation2 + $0xec0] sm:$0xff]   ;;  %v9447_v54 = vld [vmem:[#allocation2 + $0xfd0] sm:$0xff]  }
 0x1c2   :  { %8507 = vmatpush3.bf16.msra.mxu1 %v9356_v57  ;;  %v9402_v57 = vld [vmem:[#allocation2 + $0xe00] sm:$0xff]  }
 0x1c3   :  { %8508 = vmatprep.subr.bf16.mxu1 %v9359_v60  ;;  %v9405_v60 = vld [vmem:[#allocation2 + $0xe48] sm:$0xff]  }
 0x1c4   :  { %8487 = vmatpush3.bf16.msra.mxu0 %v9358_v59  ;;  %v9404_v59 = vld [vmem:[#allocation2 + $0xe80] sm:$0xff]  }
 0x1c5   :  { %8516 = vmatprep.subr.bf16.mxu0 %v9363_v1  ;;  %v9410_v1 = vld [vmem:[#allocation2 + $0xe10] sm:$0xff]  }
 0x1c6   :  { %8509 = vmatpush3.bf16.msra.mxu1 %v9362_v0  ;;  %v9409_v0 = vld [vmem:[#allocation2 + $0xe50] sm:$0xff]  }
 0x1c7   :  { %6431 = vmatmul.mubr.bf16.vlgmr.msra.gmra.mrb[48].mxu0 %v7265_v62  ;;  %8538 = vmatprep.subr.bf16.mxu1 %v9367_v6  ;;  %v9407_v62 = vld [vmem:[#allocation2 + $0xec8] sm:$0xff]   ;;  %v9415_v6 = vld [vmem:[#allocation2 + $0xed8] sm:$0xff]  }
 0x1c8   :  { %8517 = vmatpush3.bf16.msra.mxu0 %v9366_v5  ;;  %6510 = vmatprep.mubr.bf16.mxu0 %v7270_v51  ;;  %v9414_v5 = vld [vmem:[#allocation2 + $0xe18] sm:$0xff]   ;;  %v9444_v51 = vld [vmem:[#allocation2 + $0xf88] sm:$0xff]  }
 0x1c9   :  { %6471 = vmatmul.mubr.bf16.vlgmr.msra.gmra.mrb[48].mxu1 %v7267_v3  ;;  %8518 = vmatprep.subr.bf16.mxu0 %v9369_v8  ;;  %v9412_v3 = vld [vmem:[#allocation2 + $0xe90] sm:$0xff]   ;;  %v9417_v8 = vld [vmem:[#allocation2 + $0xe60] sm:$0xff]  }
 0x1ca   :  { %8539 = vmatpush3.bf16.msra.mxu1 %v9368_v7  ;;  %6550 = vmatprep.mubr.bf16.mxu1 %v7272_v56  ;;  %v9416_v7 = vld [vmem:[#allocation2 + $0xe98] sm:$0xff]  }
 0x1cb   :  { %8540 = vmatprep.subr.bf16.mxu1 %v9371_v10  ;;  %v9449_v56 = vld [vmem:[#allocation2 + $0xf58] sm:$0xff]  }
 0x1cc   :  { %8519 = vmatpush3.bf16.msra.mxu0 %v9370_v9  ;;  %v9418_v9 = vld [vmem:[#allocation2 + $0xe20] sm:$0xff]  }
 0x1cd   :  { %8520 = vmatprep.subr.bf16.mxu0 %v9373_v12 }
 0x1ce   :  { %8541 = vmatpush3.bf16.msra.mxu1 %v9372_v11  ;;  %v9419_v11 = vld [vmem:[#allocation2 + $0xee0] sm:$0xff]  }
 0x1cf   :  { %8542 = vmatprep.subr.bf16.mxu1 %v9375_v14 }
 0x1d0   :  { %8521 = vmatpush3.bf16.msra.mxu0 %v9374_v13  ;;  %v9420_v13 = vld [vmem:[#allocation2 + $0xea0] sm:$0xff]  }
 0x1d1   :  { %8522 = vmatprep.subr.bf16.mxu0 %v9377_v16  ;;  %v9421_v16 = vld [vmem:[#allocation2 + $0xe68] sm:$0xff]  }
 0x1d2   :  { %8543 = vmatpush3.bf16.msra.mxu1 %v9376_v15 }
 0x1d3   :  { %8544 = vmatprep.subr.bf16.mxu1 %v9379_v18 }
 0x1d4   :  { %8523 = vmatpush3.bf16.msra.mxu0 %v9378_v17 }
 0x1d5   :  { %8524 = vmatprep.subr.bf16.mxu0 %v9381_v20 }
 0x1d6   :  { %8545 = vmatpush3.bf16.msra.mxu1 %v9380_v19  ;;  %v9422_v19 = vld [vmem:[#allocation2 + $0xe28] sm:$0xff]  }
 0x1d7   :  { %8546 = vmatprep.subr.bf16.mxu1 %v9383_v23 }
 0x1d8   :  { %8525 = vmatpush3.bf16.msra.mxu0 %v9382_v21 }
 0x1d9   :  { %8526 = vmatprep.subr.bf16.mxu0 %v9385_v29 }
 0x1da   :  { %v8224_v22 = vpop.f32.mrb[24].mxu0  ;;  %8547 = vmatpush3.bf16.msra.mxu1 %v9384_v26 }
 0x1db   :  { %v8225_v25 = vpop.f32.mrb[25].mxu0  ;;  %8548 = vmatprep.subr.bf16.mxu1 %v9387_v35  ;;  %v9431_v35 = vld [vmem:[#allocation2 + $0xef8] sm:$0xff]  }
 0x1dc   :  { %v8226_v27 = vadd.f32 %v8225_v25, %v8224_v22  ;;  %v8227_v28 = vpop.f32.mrb[26].mxu0  ;;  %v8246_v30 = vpop.f32.mrb[24].mxu1  ;;  %8527 = vmatpush3.bf16.msra.mxu0 %v9386_v32  ;;  %v9423_v22 = vld [vmem:[#allocation2 + $0xee8] sm:$0xff]   ;;  %v9428_v32 = vld [vmem:[#allocation2 + $0xeb0] sm:$0xff]  }
 0x1dd   :  { %v8228_v33 = vpop.f32.mrb[27].mxu0  ;;  %v8247_v34 = vpop.f32.mrb[25].mxu1  ;;  %8528 = vmatprep.subr.bf16.mxu0 %v9389_v40  ;;  %v9424_v25 = vld [vmem:[#allocation2 + $0xea8] sm:$0xff]   ;;  %v9425_v28 = vld [vmem:[#allocation2 + $0xe70] sm:$0xff]   ;;  %v9434_v40 = vld [vmem:[#allocation2 + $0xeb8] sm:$0xff]  }
 0x1de   :  { %v5953_v31 = vadd.f32 %v8226_v27, %v9825_v53  ;;  %v8248_v36 = vadd.f32 %v8247_v34, %v8246_v30  ;;  %v8249_v39 = vpop.f32.mrb[26].mxu1  ;;  %8549 = vmatpush3.bf16.msra.mxu1 %v9388_v37  ;;  %v9399_v53 = vld [vmem:[#allocation2 + $0xe40] sm:$0xff]   ;;  %v9426_v30 = vld [vmem:[#allocation2 + $0xe30] sm:$0xff]   ;;  %v9429_v33 = vld [vmem:[#allocation2 + $0xe78] sm:$0xff]  }
 0x1df   :  { %v8250_v41 = vpop.f32.mrb[27].mxu1  ;;  %8550 = vmatprep.subr.bf16.mxu1 %v9391_v44  ;;  %v9430_v34 = vld [vmem:[#allocation2 + $0xe38] sm:$0xff]  }
 0x1e0   :  { %v9834_v42 = vadd.f32 %v8248_v36, %v5953_v31  ;;  %8529 = vmatpush3.bf16.msra.mxu0 %v9390_v43  ;;  %v9427_v31 = vld [vmem:[#allocation2 + $0xef0] sm:$0xff]   ;;  %v89_v36 = vld [vmem:[%s9931_s0 + $0xe0] sm:$0xff] }
 0x1e1   :  { %8530 = vmatprep.subr.bf16.mxu0 %v9393_v46  ;;  %v7273_v37 = vcombine.low %v89_v36, %v89_v36  ;;  %v7274_v39 = vcombine.high %v89_v36, %v89_v36  ;;  %v9435_v41 = vld [vmem:[#allocation2 + $0xf40] sm:$0xff]   ;;  %v9478_v36 = vld [vmem:[#allocation2 + $0x1008] sm:$0xff]  }
 0x1e2   :  { %8551 = vmatpush3.bf16.msra.mxu1 %v9392_v45  ;;  %v9438_v45 = vld [vmem:[#allocation2 + $0xf00] sm:$0xff]  }
 0x1e3   :  { %8552 = vmatprep.subr.bf16.mxu1 %v9395_v48  ;;  %v9439_v46 = vld [vmem:[#allocation2 + $0xfc0] sm:$0xff]   ;;  %v9441_v48 = vld [vmem:[#allocation2 + $0xf48] sm:$0xff]  }
 0x1e4   :  { %8531 = vmatpush3.bf16.msra.mxu0 %v9394_v47  ;;  %v9440_v47 = vld [vmem:[#allocation2 + $0xf80] sm:$0xff]  }
 0x1e5   :  { %8560 = vmatprep.subr.bf16.mxu0 %v9399_v53  ;;  %v9446_v53 = vld [vmem:[#allocation2 + $0xf10] sm:$0xff]  }
 0x1e6   :  { %8553 = vmatpush3.bf16.msra.mxu1 %v9398_v52  ;;  %v9445_v52 = vld [vmem:[#allocation2 + $0xf50] sm:$0xff]  }
 0x1e7   :  { %6511 = vmatmul.mubr.bf16.vlgmr.msra.gmra.mrb[52].mxu0 %v7269_v50  ;;  %8582 = vmatprep.subr.bf16.mxu1 %v9403_v58  ;;  %v9443_v50 = vld [vmem:[#allocation2 + $0xfc8] sm:$0xff]   ;;  %v9451_v58 = vld [vmem:[#allocation2 + $0xfd8] sm:$0xff]  }
 0x1e8   :  { %8561 = vmatpush3.bf16.msra.mxu0 %v9402_v57  ;;  %6590 = vmatprep.mubr.bf16.mxu0 %v7274_v39  ;;  %v9450_v57 = vld [vmem:[#allocation2 + $0xf18] sm:$0xff]   ;;  %v9480_v39 = vld [vmem:[#allocation2 + $0x1088] sm:$0xff]  }
 0x1e9   :  { %6551 = vmatmul.mubr.bf16.vlgmr.msra.gmra.mrb[52].mxu1 %v7271_v55  ;;  %8562 = vmatprep.subr.bf16.mxu0 %v9405_v60  ;;  %v9448_v55 = vld [vmem:[#allocation2 + $0xf90] sm:$0xff]   ;;  %v9453_v60 = vld [vmem:[#allocation2 + $0xf60] sm:$0xff]  }
 0x1ea   :  { %8583 = vmatpush3.bf16.msra.mxu1 %v9404_v59  ;;  %v9452_v59 = vld [vmem:[#allocation2 + $0xf98] sm:$0xff]  }
 0x1eb   :  { %8584 = vmatprep.subr.bf16.mxu1 %v9407_v62  ;;  %v9454_v62 = vld [vmem:[#allocation2 + $0xf20] sm:$0xff]  }
 0x1ec   :  { %8563 = vmatpush3.bf16.msra.mxu0 %v9406_v61 }
 0x1ed   :  { %8564 = vmatprep.subr.bf16.mxu0 %v9409_v0  ;;  %v9455_v0 = vld [vmem:[#allocation2 + $0xfe0] sm:$0xff]  }
 0x1ee   :  { %8585 = vmatpush3.bf16.msra.mxu1 %v9408_v63 }
 0x1ef   :  { %8586 = vmatprep.subr.bf16.mxu1 %v9411_v2 }
 0x1f0   :  { %8565 = vmatpush3.bf16.msra.mxu0 %v9410_v1 }
 0x1f1   :  { %8566 = vmatprep.subr.bf16.mxu0 %v9413_v4 }
 0x1f2   :  { %8587 = vmatpush3.bf16.msra.mxu1 %v9412_v3  ;;  %v9456_v3 = vld [vmem:[#allocation2 + $0xfa0] sm:$0xff]  }
 0x1f3   :  { %8588 = vmatprep.subr.bf16.mxu1 %v9415_v6  ;;  %v9457_v6 = vld [vmem:[#allocation2 + $0xf68] sm:$0xff]  }
 0x1f4   :  { %8567 = vmatpush3.bf16.msra.mxu0 %v9414_v5 }
 0x1f5   :  { %8568 = vmatprep.subr.bf16.mxu0 %v9417_v8  ;;  %v9458_v8 = vld [vmem:[#allocation2 + $0xf28] sm:$0xff]  }
 0x1f6   :  { %8589 = vmatpush3.bf16.msra.mxu1 %v9416_v7 }
 0x1f7   :  { %8590 = vmatprep.subr.bf16.mxu1 %v9419_v11  ;;  %v9459_v11 = vld [vmem:[#allocation2 + $0xfe8] sm:$0xff]  }
 0x1f8   :  { %8569 = vmatpush3.bf16.msra.mxu0 %v9418_v9 }
 0x1f9   :  { %8570 = vmatprep.subr.bf16.mxu0 %v9421_v16  ;;  %v9461_v16 = vld [vmem:[#allocation2 + $0xf70] sm:$0xff]  }
 0x1fa   :  { %v8268_v10 = vpop.f32.mrb[28].mxu0  ;;  %8591 = vmatpush3.bf16.msra.mxu1 %v9420_v13  ;;  %v9460_v13 = vld [vmem:[#allocation2 + $0xfa8] sm:$0xff]  }
 0x1fb   :  { %v8269_v12 = vpop.f32.mrb[29].mxu0  ;;  %8592 = vmatprep.subr.bf16.mxu1 %v9423_v22  ;;  %v9467_v22 = vld [vmem:[#allocation2 + $0xff8] sm:$0xff]  }
 0x1fc   :  { %v8270_v14 = vadd.f32 %v8269_v12, %v8268_v10  ;;  %v8271_v15 = vpop.f32.mrb[30].mxu0  ;;  %v8290_v17 = vpop.f32.mrb[28].mxu1  ;;  %8571 = vmatpush3.bf16.msra.mxu0 %v9422_v19  ;;  %v9464_v19 = vld [vmem:[#allocation2 + $0xfb0] sm:$0xff]  }
 0x1fd   :  { %v8272_v20 = vpop.f32.mrb[31].mxu0  ;;  %v8291_v21 = vpop.f32.mrb[29].mxu1  ;;  %8572 = vmatprep.subr.bf16.mxu0 %v9425_v28  ;;  %v9471_v28 = vld [vmem:[#allocation2 + $0x1040] sm:$0xff]  }
 0x1fe   :  { %v6033_v18 = vadd.f32 %v8270_v14, %v9834_v42  ;;  %v8292_v23 = vadd.f32 %v8291_v21, %v8290_v17  ;;  %v8293_v26 = vpop.f32.mrb[30].mxu1  ;;  %8593 = vmatpush3.bf16.msra.mxu1 %v9424_v25  ;;  %v90_v42 = vld [vmem:[%s9931_s0 + $0xe8] sm:$0xff]  ;;  %v9462_v17 = vld [vmem:[#allocation2 + $0xf30] sm:$0xff]   ;;  %v9465_v20 = vld [vmem:[#allocation2 + $0xf78] sm:$0xff]  }
 0x1ff   :  { %v8294_v29 = vpop.f32.mrb[31].mxu1  ;;  %8594 = vmatprep.subr.bf16.mxu1 %v9427_v31  ;;  %v7275_v43 = vcombine.low %v90_v42, %v90_v42  ;;  %v7276_v44 = vcombine.high %v90_v42, %v90_v42  ;;  %v9466_v21 = vld [vmem:[#allocation2 + $0xf38] sm:$0xff]   ;;  %v9483_v42 = vld [vmem:[#allocation2 + $0x10d0] sm:$0xff]  }
 0x200   :  { %v9843_v27 = vadd.f32 %v8292_v23, %v6033_v18  ;;  %8573 = vmatpush3.bf16.msra.mxu0 %v9426_v30  ;;  %v9463_v18 = vld [vmem:[#allocation2 + $0xff0] sm:$0xff]   ;;  %v92_v29 = vld [vmem:[%s9931_s0 + $0xf8] sm:$0xff] }
 0x201   :  { %8574 = vmatprep.subr.bf16.mxu0 %v9429_v33  ;;  %6630 = vmatprep.mubr.bf16.mxu1 %v7276_v44  ;;  %v91_v23 = vld [vmem:[%s9931_s0 + $0xf0] sm:$0xff]  ;;  %v7279_v30 = vcombine.low %v92_v29, %v92_v29  ;;  %v7280_v31 = vcombine.high %v92_v29, %v92_v29  ;;  %v9475_v33 = vld [vmem:[#allocation2 + $0x10c0] sm:$0xff]   ;;  %v9485_v44 = vld [vmem:[#allocation2 + $0x1058] sm:$0xff]  }
 0x202   :  { %8595 = vmatpush3.bf16.msra.mxu1 %v9428_v32  ;;  %v7277_v25 = vcombine.low %v91_v23, %v91_v23  ;;  %v7278_v26 = vcombine.high %v91_v23, %v91_v23  ;;  %v9474_v32 = vld [vmem:[#allocation2 + $0x1000] sm:$0xff]   ;;  %v9514_v23 = vld [vmem:[#allocation2 + $0x1108] sm:$0xff]   ;;  %v9519_v29 = vld [vmem:[#allocation2 + $0x11d0] sm:$0xff]  }
 0x203   :  { %8596 = vmatprep.subr.bf16.mxu1 %v9431_v35  ;;  %v9477_v35 = vld [vmem:[#allocation2 + $0x1048] sm:$0xff]  }
 0x204   :  { %8575 = vmatpush3.bf16.msra.mxu0 %v9430_v34  ;;  %v9476_v34 = vld [vmem:[#allocation2 + $0x1080] sm:$0xff]  }
 0x205   :  { %8604 = vmatprep.subr.bf16.mxu0 %v9435_v41  ;;  %v9482_v41 = vld [vmem:[#allocation2 + $0x1010] sm:$0xff]  }
 0x206   :  { %8597 = vmatpush3.bf16.msra.mxu1 %v9434_v40  ;;  %v9481_v40 = vld [vmem:[#allocation2 + $0x1050] sm:$0xff]  }
 0x207   :  { %6591 = vmatmul.mubr.bf16.vlgmr.msra.gmra.mrb[56].mxu0 %v7273_v37  ;;  %8626 = vmatprep.subr.bf16.mxu1 %v9439_v46  ;;  %v9479_v37 = vld [vmem:[#allocation2 + $0x10c8] sm:$0xff]   ;;  %v9487_v46 = vld [vmem:[#allocation2 + $0x10d8] sm:$0xff]  }
 0x208   :  { %8605 = vmatpush3.bf16.msra.mxu0 %v9438_v45  ;;  %6670 = vmatprep.mubr.bf16.mxu0 %v7278_v26  ;;  %v9486_v45 = vld [vmem:[#allocation2 + $0x1018] sm:$0xff]   ;;  %v9516_v26 = vld [vmem:[#allocation2 + $0x1188] sm:$0xff]  }
 0x209   :  { %6631 = vmatmul.mubr.bf16.vlgmr.msra.gmra.mrb[56].mxu1 %v7275_v43  ;;  %8606 = vmatprep.subr.bf16.mxu0 %v9441_v48  ;;  %v9484_v43 = vld [vmem:[#allocation2 + $0x1090] sm:$0xff]   ;;  %v9489_v48 = vld [vmem:[#allocation2 + $0x1060] sm:$0xff]  }
 0x20a   :  { %8627 = vmatpush3.bf16.msra.mxu1 %v9440_v47  ;;  %6710 = vmatprep.mubr.bf16.mxu1 %v7280_v31  ;;  %v9488_v47 = vld [vmem:[#allocation2 + $0x1098] sm:$0xff]  }
 0x20b   :  { %8628 = vmatprep.subr.bf16.mxu1 %v9443_v50  ;;  %v9521_v31 = vld [vmem:[#allocation2 + $0x1158] sm:$0xff]  }
 0x20c   :  { %8607 = vmatpush3.bf16.msra.mxu0 %v9442_v49  ;;  %v9490_v49 = vld [vmem:[#allocation2 + $0x1020] sm:$0xff]  }
 0x20d   :  { %8608 = vmatprep.subr.bf16.mxu0 %v9445_v52 }
 0x20e   :  { %8629 = vmatpush3.bf16.msra.mxu1 %v9444_v51  ;;  %v9491_v51 = vld [vmem:[#allocation2 + $0x10e0] sm:$0xff]  }
 0x20f   :  { %8630 = vmatprep.subr.bf16.mxu1 %v9447_v54 }
 0x210   :  { %8609 = vmatpush3.bf16.msra.mxu0 %v9446_v53  ;;  %v9492_v53 = vld [vmem:[#allocation2 + $0x10a0] sm:$0xff]  }
 0x211   :  { %8610 = vmatprep.subr.bf16.mxu0 %v9449_v56  ;;  %v9493_v56 = vld [vmem:[#allocation2 + $0x1068] sm:$0xff]  }
 0x212   :  { %8631 = vmatpush3.bf16.msra.mxu1 %v9448_v55 }
 0x213   :  { %8632 = vmatprep.subr.bf16.mxu1 %v9451_v58 }
 0x214   :  { %8611 = vmatpush3.bf16.msra.mxu0 %v9450_v57 }
 0x215   :  { %8612 = vmatprep.subr.bf16.mxu0 %v9453_v60 }
 0x216   :  { %8633 = vmatpush3.bf16.msra.mxu1 %v9452_v59  ;;  %v9494_v59 = vld [vmem:[#allocation2 + $0x1028] sm:$0xff]  }
 0x217   :  { %8634 = vmatprep.subr.bf16.mxu1 %v9455_v0  ;;  %v9496_v0 = vld [vmem:[#allocation2 + $0x10a8] sm:$0xff]  }
 0x218   :  { %8613 = vmatpush3.bf16.msra.mxu0 %v9454_v62  ;;  %v9495_v62 = vld [vmem:[#allocation2 + $0x10e8] sm:$0xff]  }
 0x219   :  { %8614 = vmatprep.subr.bf16.mxu0 %v9457_v6  ;;  %v9499_v6 = vld [vmem:[#allocation2 + $0x10f0] sm:$0xff]  }
 0x21a   :  { %v8312_v61 = vpop.f32.mrb[32].mxu0  ;;  %8635 = vmatpush3.bf16.msra.mxu1 %v9456_v3 }
 0x21b   :  { %v8313_v63 = vpop.f32.mrb[33].mxu0  ;;  %8636 = vmatprep.subr.bf16.mxu1 %v9459_v11  ;;  %v93_v11 = vld [vmem:[%s9931_s0 + $0x100] sm:$0xff] }
 0x21c   :  { %v8314_v1 = vadd.f32 %v8313_v63, %v8312_v61  ;;  %v8315_v2 = vpop.f32.mrb[34].mxu0  ;;  %v8334_v4 = vpop.f32.mrb[32].mxu1  ;;  %8615 = vmatpush3.bf16.msra.mxu0 %v9458_v8  ;;  %v9501_v8 = vld [vmem:[#allocation2 + $0x1078] sm:$0xff]  }
 0x21d   :  { %v8316_v7 = vpop.f32.mrb[35].mxu0  ;;  %v8335_v9 = vpop.f32.mrb[33].mxu1  ;;  %8616 = vmatprep.subr.bf16.mxu0 %v9461_v16  ;;  %v9497_v2 = vld [vmem:[#allocation2 + $0x1070] sm:$0xff]   ;;  %v94_v16 = vld [vmem:[%s9931_s0 + $0x108] sm:$0xff] }
 0x21e   :  { %v6113_v5 = vadd.f32 %v8314_v1, %v9843_v27  ;;  %v8336_v10 = vadd.f32 %v8335_v9, %v8334_v4  ;;  %v8337_v12 = vpop.f32.mrb[34].mxu1  ;;  %8637 = vmatpush3.bf16.msra.mxu1 %v9460_v13  ;;  %v9470_v27 = vld [vmem:[#allocation2 + $0xfb8] sm:$0xff]   ;;  %v9500_v7 = vld [vmem:[#allocation2 + $0x10b0] sm:$0xff]   ;;  %v7282_v13 = vcombine.high %v93_v11, %v93_v11 }
 0x21f   :  { %v8338_v14 = vpop.f32.mrb[35].mxu1  ;;  %8638 = vmatprep.subr.bf16.mxu1 %v9463_v18  ;;  %v9502_v9 = vld [vmem:[#allocation2 + $0x1038] sm:$0xff]   ;;  %v7281_v12 = vcombine.low %v93_v11, %v93_v11  ;;  %v7284_v18 = vcombine.high %v94_v16, %v94_v16  ;;  %v9550_v11 = vld [vmem:[#allocation2 + $0x1208] sm:$0xff]  }
 0x220   :  { %v9852_v15 = vadd.f32 %v8336_v10, %v6113_v5  ;;  %8617 = vmatpush3.bf16.msra.mxu0 %v9462_v17  ;;  %v9498_v5 = vld [vmem:[#allocation2 + $0x1030] sm:$0xff]   ;;  %v9503_v10 = vld [vmem:[#allocation2 + $0x10f8] sm:$0xff]   ;;  %v7283_v17 = vcombine.low %v94_v16, %v94_v16 }
 0x221   :  { %8618 = vmatprep.subr.bf16.mxu0 %v9465_v20  ;;  %v9506_v14 = vld [vmem:[#allocation2 + $0x10b8] sm:$0xff]   ;;  %v9511_v20 = vld [vmem:[#allocation2 + $0x11c0] sm:$0xff]   ;;  %v9555_v16 = vld [vmem:[#allocation2 + $0x12d0] sm:$0xff]  }
 0x222   :  { %8639 = vmatpush3.bf16.msra.mxu1 %v9464_v19  ;;  %v9510_v19 = vld [vmem:[#allocation2 + $0x1100] sm:$0xff]  }
 0x223   :  { %8640 = vmatprep.subr.bf16.mxu1 %v9467_v22  ;;  %v9513_v22 = vld [vmem:[#allocation2 + $0x1148] sm:$0xff]  }
 0x224   :  { %8619 = vmatpush3.bf16.msra.mxu0 %v9466_v21  ;;  %v9512_v21 = vld [vmem:[#allocation2 + $0x1180] sm:$0xff]  }
 0x225   :  { %8648 = vmatprep.subr.bf16.mxu0 %v9471_v28  ;;  %v9518_v28 = vld [vmem:[#allocation2 + $0x1110] sm:$0xff]  }
 0x226   :  { %8641 = vmatpush3.bf16.msra.mxu1 %v9470_v27  ;;  %v9517_v27 = vld [vmem:[#allocation2 + $0x1150] sm:$0xff]  }
 0x227   :  { %6671 = vmatmul.mubr.bf16.vlgmr.msra.gmra.mrb[60].mxu0 %v7277_v25  ;;  %8670 = vmatprep.subr.bf16.mxu1 %v9475_v33  ;;  %v9515_v25 = vld [vmem:[#allocation2 + $0x11c8] sm:$0xff]   ;;  %v9523_v33 = vld [vmem:[#allocation2 + $0x11d8] sm:$0xff]  }
 0x228   :  { %8649 = vmatpush3.bf16.msra.mxu0 %v9474_v32  ;;  %6750 = vmatprep.mubr.bf16.mxu0 %v7282_v13  ;;  %v9522_v32 = vld [vmem:[#allocation2 + $0x1118] sm:$0xff]   ;;  %v9552_v13 = vld [vmem:[#allocation2 + $0x1288] sm:$0xff]  }
 0x229   :  { %6711 = vmatmul.mubr.bf16.vlgmr.msra.gmra.mrb[60].mxu1 %v7279_v30  ;;  %8650 = vmatprep.subr.bf16.mxu0 %v9477_v35  ;;  %v9520_v30 = vld [vmem:[#allocation2 + $0x1190] sm:$0xff]   ;;  %v9525_v35 = vld [vmem:[#allocation2 + $0x1160] sm:$0xff]  }
 0x22a   :  { %8671 = vmatpush3.bf16.msra.mxu1 %v9476_v34  ;;  %6790 = vmatprep.mubr.bf16.mxu1 %v7284_v18  ;;  %v9524_v34 = vld [vmem:[#allocation2 + $0x1198] sm:$0xff]  }
 0x22b   :  { %8672 = vmatprep.subr.bf16.mxu1 %v9479_v37  ;;  %v9557_v18 = vld [vmem:[#allocation2 + $0x1258] sm:$0xff]  }
 0x22c   :  { %8651 = vmatpush3.bf16.msra.mxu0 %v9478_v36  ;;  %v9526_v36 = vld [vmem:[#allocation2 + $0x1120] sm:$0xff]  }
 0x22d   :  { %8652 = vmatprep.subr.bf16.mxu0 %v9481_v40 }
 0x22e   :  { %8673 = vmatpush3.bf16.msra.mxu1 %v9480_v39  ;;  %v9527_v39 = vld [vmem:[#allocation2 + $0x11e0] sm:$0xff]  }
 0x22f   :  { %8674 = vmatprep.subr.bf16.mxu1 %v9483_v42 }
 0x230   :  { %8653 = vmatpush3.bf16.msra.mxu0 %v9482_v41  ;;  %v9528_v41 = vld [vmem:[#allocation2 + $0x11a0] sm:$0xff]  }
 0x231   :  { %8654 = vmatprep.subr.bf16.mxu0 %v9485_v44  ;;  %v9529_v44 = vld [vmem:[#allocation2 + $0x1168] sm:$0xff]  }
 0x232   :  { %8675 = vmatpush3.bf16.msra.mxu1 %v9484_v43 }
 0x233   :  { %8676 = vmatprep.subr.bf16.mxu1 %v9487_v46 }
 0x234   :  { %8655 = vmatpush3.bf16.msra.mxu0 %v9486_v45 }
 0x235   :  { %8656 = vmatprep.subr.bf16.mxu0 %v9489_v48 }
 0x236   :  { %8677 = vmatpush3.bf16.msra.mxu1 %v9488_v47  ;;  %v9530_v47 = vld [vmem:[#allocation2 + $0x1128] sm:$0xff]  }
 0x237   :  { %8678 = vmatprep.subr.bf16.mxu1 %v9491_v51 }
 0x238   :  { %8657 = vmatpush3.bf16.msra.mxu0 %v9490_v49 }
 0x239   :  { %8658 = vmatprep.subr.bf16.mxu0 %v9493_v56 }
 0x23a   :  { %v8356_v50 = vpop.f32.mrb[36].mxu0  ;;  %8679 = vmatpush3.bf16.msra.mxu1 %v9492_v53 }
 0x23b   :  { %v8357_v52 = vpop.f32.mrb[37].mxu0  ;;  %8680 = vmatprep.subr.bf16.mxu1 %v9495_v62  ;;  %v9539_v62 = vld [vmem:[#allocation2 + $0x11f8] sm:$0xff]  }
 0x23c   :  { %v8358_v54 = vadd.f32 %v8357_v52, %v8356_v50  ;;  %v8359_v55 = vpop.f32.mrb[38].mxu0  ;;  %v8378_v57 = vpop.f32.mrb[36].mxu1  ;;  %8659 = vmatpush3.bf16.msra.mxu0 %v9494_v59  ;;  %v9531_v50 = vld [vmem:[#allocation2 + $0x11e8] sm:$0xff]   ;;  %v9536_v59 = vld [vmem:[#allocation2 + $0x11b0] sm:$0xff]  }
 0x23d   :  { %v8360_v60 = vpop.f32.mrb[39].mxu0  ;;  %v8379_v61 = vpop.f32.mrb[37].mxu1  ;;  %8660 = vmatprep.subr.bf16.mxu0 %v9497_v2  ;;  %v9532_v52 = vld [vmem:[#allocation2 + $0x11a8] sm:$0xff]   ;;  %v9533_v55 = vld [vmem:[#allocation2 + $0x1170] sm:$0xff]   ;;  %v9542_v2 = vld [vmem:[#allocation2 + $0x11b8] sm:$0xff]  }
 0x23e   :  { %v6193_v58 = vadd.f32 %v8358_v54, %v9852_v15  ;;  %v8380_v63 = vadd.f32 %v8379_v61, %v8378_v57  ;;  %v8381_v1 = vpop.f32.mrb[38].mxu1  ;;  %8681 = vmatpush3.bf16.msra.mxu1 %v9496_v0  ;;  %v9507_v15 = vld [vmem:[#allocation2 + $0x1140] sm:$0xff]   ;;  %v9534_v57 = vld [vmem:[#allocation2 + $0x1130] sm:$0xff]   ;;  %v9537_v60 = vld [vmem:[#allocation2 + $0x1178] sm:$0xff]  }
 0x23f   :  { %v8382_v3 = vpop.f32.mrb[39].mxu1  ;;  %8682 = vmatprep.subr.bf16.mxu1 %v9499_v6  ;;  %v9538_v61 = vld [vmem:[#allocation2 + $0x1138] sm:$0xff]  }
 0x240   :  { %v9861_v4 = vadd.f32 %v8380_v63, %v6193_v58  ;;  %8661 = vmatpush3.bf16.msra.mxu0 %v9498_v5  ;;  %v9535_v58 = vld [vmem:[#allocation2 + $0x11f0] sm:$0xff]   ;;  %v9543_v3 = vld [vmem:[#allocation2 + $0x1240] sm:$0xff]  }
 0x241   :  { %8662 = vmatprep.subr.bf16.mxu0 %v9501_v8  ;;  %v95_v63 = vld [vmem:[%s9931_s0 + $0x110] sm:$0xff]  ;;  %v9547_v8 = vld [vmem:[#allocation2 + $0x12c0] sm:$0xff]  }
 0x242   :  { %8683 = vmatpush3.bf16.msra.mxu1 %v9500_v7  ;;  %v7285_v0 = vcombine.low %v95_v63, %v95_v63  ;;  %v7286_v1 = vcombine.high %v95_v63, %v95_v63  ;;  %v9546_v7 = vld [vmem:[#allocation2 + $0x1200] sm:$0xff]   ;;  %v9585_v63 = vld [vmem:[#allocation2 + $0x1308] sm:$0xff]  }
 0x243   :  { %8684 = vmatprep.subr.bf16.mxu1 %v9503_v10  ;;  %v9549_v10 = vld [vmem:[#allocation2 + $0x1248] sm:$0xff]  }
 0x244   :  { %8663 = vmatpush3.bf16.msra.mxu0 %v9502_v9  ;;  %v9548_v9 = vld [vmem:[#allocation2 + $0x1280] sm:$0xff]  }
 0x245   :  { %8692 = vmatprep.subr.bf16.mxu0 %v9507_v15  ;;  %v9554_v15 = vld [vmem:[#allocation2 + $0x1210] sm:$0xff]  }
 0x246   :  { %8685 = vmatpush3.bf16.msra.mxu1 %v9506_v14  ;;  %v9553_v14 = vld [vmem:[#allocation2 + $0x1250] sm:$0xff]  }
 0x247   :  { %6751 = vmatmul.mubr.bf16.vlgmr.msra.gmra.mrb[64].mxu0 %v7281_v12  ;;  %8714 = vmatprep.subr.bf16.mxu1 %v9511_v20  ;;  %v9551_v12 = vld [vmem:[#allocation2 + $0x12c8] sm:$0xff]   ;;  %v9559_v20 = vld [vmem:[#allocation2 + $0x12d8] sm:$0xff]  }
 0x248   :  { %8693 = vmatpush3.bf16.msra.mxu0 %v9510_v19  ;;  %6830 = vmatprep.mubr.bf16.mxu0 %v7286_v1  ;;  %v9558_v19 = vld [vmem:[#allocation2 + $0x1218] sm:$0xff]   ;;  %v9587_v1 = vld [vmem:[#allocation2 + $0x1350] sm:$0xff]  }
 0x249   :  { %6791 = vmatmul.mubr.bf16.vlgmr.msra.gmra.mrb[64].mxu1 %v7283_v17  ;;  %8694 = vmatprep.subr.bf16.mxu0 %v9513_v22  ;;  %v9556_v17 = vld [vmem:[#allocation2 + $0x1290] sm:$0xff]   ;;  %v9561_v22 = vld [vmem:[#allocation2 + $0x1260] sm:$0xff]  }
 0x24a   :  { %8715 = vmatpush3.bf16.msra.mxu1 %v9512_v21  ;;  %v9560_v21 = vld [vmem:[#allocation2 + $0x1298] sm:$0xff]  }
 0x24b   :  { %8716 = vmatprep.subr.bf16.mxu1 %v9515_v25  ;;  %v9562_v25 = vld [vmem:[#allocation2 + $0x1220] sm:$0xff]  }
 0x24c   :  { %8695 = vmatpush3.bf16.msra.mxu0 %v9514_v23 }
 0x24d   :  { %8696 = vmatprep.subr.bf16.mxu0 %v9517_v27  ;;  %v9563_v27 = vld [vmem:[#allocation2 + $0x12e0] sm:$0xff]  }
 0x24e   :  { %8717 = vmatpush3.bf16.msra.mxu1 %v9516_v26 }
 0x24f   :  { %8718 = vmatprep.subr.bf16.mxu1 %v9519_v29 }
 0x250   :  { %8697 = vmatpush3.bf16.msra.mxu0 %v9518_v28 }
 0x251   :  { %8698 = vmatprep.subr.bf16.mxu0 %v9521_v31 }
 0x252   :  { %8719 = vmatpush3.bf16.msra.mxu1 %v9520_v30  ;;  %v9564_v30 = vld [vmem:[#allocation2 + $0x12a0] sm:$0xff]  }
 0x253   :  { %8720 = vmatprep.subr.bf16.mxu1 %v9523_v33  ;;  %v9565_v33 = vld [vmem:[#allocation2 + $0x1268] sm:$0xff]  }
 0x254   :  { %8699 = vmatpush3.bf16.msra.mxu0 %v9522_v32 }
 0x255   :  { %8700 = vmatprep.subr.bf16.mxu0 %v9525_v35  ;;  %v9566_v35 = vld [vmem:[#allocation2 + $0x1228] sm:$0xff]  }
 0x256   :  { %8721 = vmatpush3.bf16.msra.mxu1 %v9524_v34 }
 0x257   :  { %8722 = vmatprep.subr.bf16.mxu1 %v9527_v39  ;;  %v9567_v39 = vld [vmem:[#allocation2 + $0x12e8] sm:$0xff]  }
 0x258   :  { %8701 = vmatpush3.bf16.msra.mxu0 %v9526_v36 }
 0x259   :  { %8702 = vmatprep.subr.bf16.mxu0 %v9529_v44  ;;  %v9569_v44 = vld [vmem:[#allocation2 + $0x1270] sm:$0xff]  }
 0x25a   :  { %v8400_v37 = vpop.f32.mrb[40].mxu0  ;;  %8723 = vmatpush3.bf16.msra.mxu1 %v9528_v41  ;;  %v9568_v41 = vld [vmem:[#allocation2 + $0x12a8] sm:$0xff]  }
 0x25b   :  { %v8401_v40 = vpop.f32.mrb[41].mxu0  ;;  %8724 = vmatprep.subr.bf16.mxu1 %v9531_v50  ;;  %v9575_v50 = vld [vmem:[#allocation2 + $0x12f8] sm:$0xff]  }
 0x25c   :  { %v8402_v42 = vadd.f32 %v8401_v40, %v8400_v37  ;;  %v8403_v43 = vpop.f32.mrb[42].mxu0  ;;  %v8422_v45 = vpop.f32.mrb[40].mxu1  ;;  %8703 = vmatpush3.bf16.msra.mxu0 %v9530_v47  ;;  %v9572_v47 = vld [vmem:[#allocation2 + $0x12b0] sm:$0xff]  }
 0x25d   :  { %v8404_v48 = vpop.f32.mrb[43].mxu0  ;;  %v8423_v49 = vpop.f32.mrb[41].mxu1  ;;  %8704 = vmatprep.subr.bf16.mxu0 %v9533_v55  ;;  %v9579_v55 = vld [vmem:[#allocation2 + $0x1340] sm:$0xff]  }
 0x25e   :  { %v6273_v46 = vadd.f32 %v8402_v42, %v9861_v4  ;;  %v8424_v51 = vadd.f32 %v8423_v49, %v8422_v45  ;;  %v8425_v53 = vpop.f32.mrb[42].mxu1  ;;  %8725 = vmatpush3.bf16.msra.mxu1 %v9532_v52  ;;  %v96_v4 = vld [vmem:[%s9931_s0 + $0x118] sm:$0xff]  ;;  %v9570_v45 = vld [vmem:[#allocation2 + $0x1230] sm:$0xff]  }
 0x25f   :  { %v8426_v56 = vpop.f32.mrb[43].mxu1  ;;  %8726 = vmatprep.subr.bf16.mxu1 %v9535_v58  ;;  %v7287_v5 = vcombine.low %v96_v4, %v96_v4  ;;  %v7288_v6 = vcombine.high %v96_v4, %v96_v4  ;;  %v9573_v48 = vld [vmem:[#allocation2 + $0x1278] sm:$0xff]  }
 0x260   :  { %v9870_v54 = vadd.f32 %v8424_v51, %v6273_v46  ;;  %8705 = vmatpush3.bf16.msra.mxu0 %v9534_v57  ;;  %v9571_v46 = vld [vmem:[#allocation2 + $0x12f0] sm:$0xff]   ;;  %v9574_v49 = vld [vmem:[#allocation2 + $0x1238] sm:$0xff]   ;;  %v97_v51 = vld [vmem:[%s9931_s0 + $0x120] sm:$0xff] }
 0x261   :  { %8706 = vmatprep.subr.bf16.mxu0 %v9537_v60  ;;  %6870 = vmatprep.mubr.bf16.mxu1 %v7288_v6  ;;  %v7289_v52 = vcombine.low %v97_v51, %v97_v51  ;;  %v7290_v53 = vcombine.high %v97_v51, %v97_v51  ;;  %v98_v56 = vld [vmem:[%s9931_s0 + $0x128] sm:$0xff]  ;;  %v9583_v60 = vld [vmem:[#allocation2 + $0x1380] sm:$0xff]   ;;  %v9590_v4 = vld [vmem:[#allocation2 + $0x1358] sm:$0xff]  }
 0x262   :  { %8727 = vmatpush3.bf16.msra.mxu1 %v9536_v59  ;;  %v7291_v57 = vcombine.low %v98_v56, %v98_v56  ;;  %v7292_v58 = vcombine.high %v98_v56, %v98_v56  ;;  %v9582_v59 = vld [vmem:[#allocation2 + $0x1300] sm:$0xff]  }
 0x263   :  { %8728 = vmatprep.subr.bf16.mxu1 %v9539_v62  ;;  %v9686_v62 = vmov 0.0   ;;  %v9593_v6 = vld [vmem:[#allocation2 + $0x1360] sm:$0xff]  }
 0x264   :  { %8707 = vmatpush3.bf16.msra.mxu0 %v9538_v61  ;;  %v9584_v61 = vld [vmem:[#allocation2 + $0x1348] sm:$0xff]  }
 0x265   :  { %8736 = vmatprep.subr.bf16.mxu0 %v9543_v3  ;;  %v9589_v3 = vld [vmem:[#allocation2 + $0x1390] sm:$0xff]  }
 0x266   :  { %8729 = vmatpush3.bf16.msra.mxu1 %v9542_v2  ;;  %v9588_v2 = vld [vmem:[#allocation2 + $0x1310] sm:$0xff]  }
 0x267   :  { %6831 = vmatmul.mubr.bf16.vlgmr.msra.gmra.mrb[68].mxu0 %v7285_v0  ;;  %8758 = vmatprep.subr.bf16.mxu1 %v9547_v8  ;;  %v9586_v0 = vld [vmem:[#allocation2 + $0x1388] sm:$0xff]   ;;  %v9594_v8 = vld [vmem:[#allocation2 + $0x1320] sm:$0xff]  }
 0x268   :  { %8737 = vmatpush3.bf16.msra.mxu0 %v9546_v7  ;;  %6910 = vmatprep.mubr.bf16.mxu0 %v7290_v53  ;;  %v9592_v7 = vld [vmem:[#allocation2 + $0x1398] sm:$0xff]  }
 0x269   :  { %6871 = vmatmul.mubr.bf16.vlgmr.msra.gmra.mrb[68].mxu1 %v7287_v5  ;;  %8738 = vmatprep.subr.bf16.mxu0 %v9549_v10  ;;  %v9591_v5 = vld [vmem:[#allocation2 + $0x1318] sm:$0xff]  }
 0x26a   :  { %8759 = vmatpush3.bf16.msra.mxu1 %v9548_v9  ;;  %6950 = vmatprep.mubr.bf16.mxu1 %v7292_v58  ;;  %v9596_v9 = vld [vmem:[#allocation2 + $0x1368] sm:$0xff]  }
 0x26b   :  { %8760 = vmatprep.subr.bf16.mxu1 %v9551_v12 }
 0x26c   :  { %8739 = vmatpush3.bf16.msra.mxu0 %v9550_v11  ;;  %v9595_v11 = vld [vmem:[#allocation2 + $0x13a0] sm:$0xff]  }
 0x26d   :  { %8740 = vmatprep.subr.bf16.mxu0 %v9553_v14 }
 0x26e   :  { %8761 = vmatpush3.bf16.msra.mxu1 %v9552_v13  ;;  %v9597_v13 = vld [vmem:[#allocation2 + $0x1328] sm:$0xff]  }
 0x26f   :  { %8762 = vmatprep.subr.bf16.mxu1 %v9555_v16 }
 0x270   :  { %8741 = vmatpush3.bf16.msra.mxu0 %v9554_v15 }
 0x271   :  { %8742 = vmatprep.subr.bf16.mxu0 %v9557_v18 }
 0x272   :  { %8763 = vmatpush3.bf16.msra.mxu1 %v9556_v17 }
 0x273   :  { %8764 = vmatprep.subr.bf16.mxu1 %v9559_v20 }
 0x274   :  { %8743 = vmatpush3.bf16.msra.mxu0 %v9558_v19  ;;  %v9599_v19 = vld [vmem:[#allocation2 + $0x1370] sm:$0xff]  }
 0x275   :  { %8744 = vmatprep.subr.bf16.mxu0 %v9561_v22  ;;  %v9598_v22 = vld [vmem:[#allocation2 + $0x13a8] sm:$0xff]  }
 0x276   :  { %8765 = vmatpush3.bf16.msra.mxu1 %v9560_v21 }
 0x277   :  { %8766 = vmatprep.subr.bf16.mxu1 %v9563_v27 }
 0x278   :  { %8745 = vmatpush3.bf16.msra.mxu0 %v9562_v25 }
 0x279   :  { %8746 = vmatprep.subr.bf16.mxu0 %v9565_v33  ;;  %v9606_v33 = vld [vmem:[#allocation2 + $0x13b8] sm:$0xff]  }
 0x27a   :  { %v8444_v23 = vpop.f32.mrb[44].mxu0  ;;  %8767 = vmatpush3.bf16.msra.mxu1 %v9564_v30  ;;  %v9602_v30 = vld [vmem:[#allocation2 + $0x1378] sm:$0xff]  }
 0x27b   :  { %v8445_v26 = vpop.f32.mrb[45].mxu0  ;;  %8768 = vmatprep.subr.bf16.mxu1 %v9567_v39 }
 0x27c   :  { %v8446_v28 = vadd.f32 %v8445_v26, %v8444_v23  ;;  %v8447_v29 = vpop.f32.mrb[46].mxu0  ;;  %v8466_v31 = vpop.f32.mrb[44].mxu1  ;;  %8747 = vmatpush3.bf16.msra.mxu0 %v9566_v35  ;;  %v9600_v26 = vld [vmem:[#allocation2 + $0x1330] sm:$0xff]   ;;  %v9607_v35 = vld [vmem:[%s9931_s0 + $0x138] ss:$0 sps:$4 sm:$0xff]  }
 0x27d   :  { %v8448_v34 = vpop.f32.mrb[47].mxu0  ;;  %v8467_v36 = vpop.f32.mrb[45].mxu1  ;;  %8748 = vmatprep.subr.bf16.mxu0 %v9569_v44  ;;  %v99_v29 = vld [vmem:[%s9931_s0 + $0x130] sm:$0xff] }
 0x27e   :  { %v6353_v32 = vadd.f32 %v8446_v28, %v9870_v54  ;;  %v8468_v37 = vadd.f32 %v8467_v36, %v8466_v31  ;;  %v8469_v40 = vpop.f32.mrb[46].mxu1  ;;  %8769 = vmatpush3.bf16.msra.mxu1 %v9568_v41  ;;  %v9578_v54 = vld [vmem:[#allocation2 + $0x12b8] sm:$0xff]   ;;  %v9601_v28 = vld [vmem:[#allocation2 + $0x13b0] sm:$0xff]   ;;  %v7294_v31 = vcombine.high %v99_v29, %v99_v29  ;;  %v7293_v34 = vcombine.low %v99_v29, %v99_v29 }
 0x27f   :  { %v8470_v42 = vpop.f32.mrb[47].mxu1  ;;  %8770 = vmatprep.subr.bf16.mxu1 %v9571_v46 }
 0x280   :  { %v9879_v43 = vadd.f32 %v8468_v37, %v6353_v32  ;;  %8749 = vmatpush3.bf16.msra.mxu0 %v9570_v45  ;;  %v9603_v32 = vld [vmem:[#allocation2 + $0x1338] sm:$0xff]  }
 0x281   :  { %8750 = vmatprep.subr.bf16.mxu0 %v9573_v48 }
 0x282   :  { %8771 = vmatpush3.bf16.msra.mxu1 %v9572_v47 }
 0x283   :  { %8772 = vmatprep.subr.bf16.mxu1 %v9575_v50 }
 0x284   :  { %8751 = vmatpush3.bf16.msra.mxu0 %v9574_v49 }
 0x285   :  { %8780 = vmatprep.subr.bf16.mxu0 %v9579_v55 }
 0x286   :  { %8773 = vmatpush3.bf16.msra.mxu1 %v9578_v54 }
 0x287   :  { %6911 = vmatmul.mubr.bf16.vlgmr.msra.gmra.mrb[72].mxu0 %v7289_v52  ;;  %8829 = vmatprep.subr.bf16.mxu1 %v9686_v62 }
 0x288   :  { %8781 = vmatpush3.bf16.msra.mxu0 %v9582_v59  ;;  %6990 = vmatprep.mubr.bf16.mxu0 %v7294_v31 }
 0x289   :  { %6951 = vmatmul.mubr.bf16.vlgmr.msra.gmra.mrb[72].mxu1 %v7291_v57  ;;  %8782 = vmatprep.subr.bf16.mxu0 %v9584_v61  ;;  %v9608_v61 = vld [vmem:[#allocation4] ss:$12 sps:$4 sm:$0xff]  }
 0x28a   :  { %8830 = vmatpush3.bf16.msra.mxu1 %v9583_v60  ;;  %8845 = vmatprep.mubr.msk.bf16.mxu1 %vm9687_vm0, %v9686_v62 }
 0x28b   :  { %8831 = vmatprep.subr.bf16.mxu1 %v9686_v62 }
 0x28c   :  { %8783 = vmatpush3.bf16.msra.mxu0 %v9585_v63  ;;  %v9610_v63 = vld [vmem:[#allocation4 + $0x18] ss:$12 sps:$4 sm:$0xff]  }
 0x28d   :  { %8784 = vmatprep.subr.bf16.mxu0 %v9587_v1  ;;  %v9614_v1 = vld [vmem:[#allocation4 + $0x48] ss:$12 sps:$4 sm:$0xff]  }
 0x28e   :  { %8832 = vmatpush3.bf16.msra.mxu1 %v9586_v0  ;;  %v9612_v0 = vld [vmem:[#allocation4 + $0x30] ss:$12 sps:$4 sm:$0xff]  }
 0x28f   :  { %8833 = vmatprep.subr.bf16.mxu1 %v9686_v62 }
 0x290   :  { %8785 = vmatpush3.bf16.msra.mxu0 %v9588_v2  ;;  %v9616_v2 = vld [vmem:[#allocation4 + $0x60] ss:$12 sps:$4 sm:$0xff]  }
 0x291   :  { %8786 = vmatprep.subr.bf16.mxu0 %v9590_v4 }
 0x292   :  { %8834 = vmatpush3.bf16.msra.mxu1 %v9589_v3 }
 0x293   :  { %8835 = vmatprep.subr.bf16.mxu1 %v9686_v62 }
 0x294   :  { %8787 = vmatpush3.bf16.msra.mxu0 %v9591_v5  ;;  %v9618_v5 = vld [vmem:[#allocation4 + $0x78] ss:$12 sps:$4 sm:$0xff]  }
 0x295   :  { %8788 = vmatprep.subr.bf16.mxu0 %v9593_v6 }
 0x296   :  { %8836 = vmatpush3.bf16.msra.mxu1 %v9592_v7 }
 0x297   :  { %8837 = vmatprep.subr.bf16.mxu1 %v9686_v62 }
 0x298   :  { %8789 = vmatpush3.bf16.msra.mxu0 %v9594_v8 }
 0x299   :  { %8790 = vmatprep.subr.bf16.mxu0 %v9596_v9 }
 0x29a   :  { %v8488_v10 = vpop.f32.mrb[48].mxu0  ;;  %8838 = vmatpush3.bf16.msra.mxu1 %v9595_v11 }
 0x29b   :  { %v8489_v12 = vpop.f32.mrb[49].mxu0  ;;  %8839 = vmatprep.subr.bf16.mxu1 %v9686_v62 }
 0x29c   :  { %v8490_v14 = vadd.f32 %v8489_v12, %v8488_v10  ;;  %v8491_v15 = vpop.f32.mrb[50].mxu0  ;;  %v8510_v16 = vpop.f32.mrb[48].mxu1  ;;  %8791 = vmatpush3.bf16.msra.mxu0 %v9597_v13 }
 0x29d   :  { %v8492_v17 = vpop.f32.mrb[51].mxu0  ;;  %v8511_v18 = vpop.f32.mrb[49].mxu1  ;;  %8792 = vmatprep.subr.bf16.mxu0 %v9599_v19  ;;  %v9620_v15 = vld [vmem:[#allocation4 + $0x90] ss:$12 sps:$4 sm:$0xff]  }
 0x29e   :  { %v6433_v20 = vadd.f32 %v8490_v14, %v9879_v43  ;;  %v8512_v21 = vadd.f32 %v8511_v18, %v8510_v16  ;;  %v8513_v23 = vpop.f32.mrb[50].mxu1  ;;  %8840 = vmatpush3.bf16.msra.mxu1 %v9598_v22  ;;  %v9622_v17 = vld [vmem:[#allocation4 + $0xa8] ss:$12 sps:$4 sm:$0xff]   ;;  %v9624_v18 = vld [vmem:[#allocation4 + $0x4] ss:$12 sps:$4 sm:$0xff]  }
 0x29f   :  { %v8514_v25 = vpop.f32.mrb[51].mxu1  ;;  %8841 = vmatprep.subr.bf16.mxu1 %v9686_v62  ;;  %v9625_v19 = vld [vmem:[#allocation4 + $0x1c] ss:$12 sps:$4 sm:$0xff]   ;;  %v9628_v22 = vld [vmem:[#allocation4 + $0x64] ss:$12 sps:$4 sm:$0xff]  }
 0x2a0   :  { %v6473_v27 = vadd.f32 %v8512_v21, %v6433_v20  ;;  %8793 = vmatpush3.bf16.msra.mxu0 %v9600_v26  ;;  %v9626_v20 = vld [vmem:[#allocation4 + $0x34] ss:$12 sps:$4 sm:$0xff]   ;;  %v9627_v21 = vld [vmem:[#allocation4 + $0x4c] ss:$12 sps:$4 sm:$0xff]   ;;  %v9629_v23 = vld [vmem:[#allocation4 + $0x7c] ss:$12 sps:$4 sm:$0xff]  }
 0x2a1   :  { %8794 = vmatprep.subr.bf16.mxu0 %v9602_v30 }
 0x2a2   :  { %8842 = vmatpush3.bf16.msra.mxu1 %v9601_v28 }
 0x2a3   :  { %8843 = vmatprep.subr.bf16.mxu1 %v9686_v62 }
 0x2a4   :  { %8795 = vmatpush3.bf16.msra.mxu0 %v9603_v32 }
 0x2a5   :  { %8849 = vmatprep.subr.bf16.mxu0 %v9686_v62 }
 0x2a6   :  { %8844 = vmatpush3.bf16.msra.mxu1 %v9606_v33 }
 0x2a7   :  { %6991 = vmatmul.mubr.bf16.vlgmr.msra.gmra.mrb[76].mxu0 %v7293_v34  ;;  %8869 = vmatprep.subr.bf16.mxu1 %v9686_v62 }
 0x2a8   :  { %8865 = vmatprep.mubr.msk.bf16.mxu0 %vm9687_vm0, %v9686_v62  ;;  %8850 = vmatpush3.bf16.msra.mxu0 %v9608_v61 }
 0x2a9   :  { %8846 = vmatmul.mubr.bf16.vlgmr.msra.gmra.mrb[76].mxu1 %v9607_v35  ;;  %8851 = vmatprep.subr.bf16.mxu0 %v9686_v62 }
 0x2aa   :  { %8885 = vmatprep.mubr.msk.bf16.mxu1 %vm9687_vm0, %v9686_v62  ;;  %8870 = vmatpush3.bf16.msra.mxu1 %v9624_v18 }
 0x2ab   :  { %8871 = vmatprep.subr.bf16.mxu1 %v9686_v62 }
 0x2ac   :  { %8852 = vmatpush3.bf16.msra.mxu0 %v9610_v63 }
 0x2ad   :  { %8853 = vmatprep.subr.bf16.mxu0 %v9686_v62 }
 0x2ae   :  { %8872 = vmatpush3.bf16.msra.mxu1 %v9625_v19 }
 0x2af   :  { %8873 = vmatprep.subr.bf16.mxu1 %v9686_v62 }
 0x2b0   :  { %8854 = vmatpush3.bf16.msra.mxu0 %v9612_v0 }
 0x2b1   :  { %8855 = vmatprep.subr.bf16.mxu0 %v9686_v62 }
 0x2b2   :  { %8874 = vmatpush3.bf16.msra.mxu1 %v9626_v20 }
 0x2b3   :  { %8875 = vmatprep.subr.bf16.mxu1 %v9686_v62 }
 0x2b4   :  { %8856 = vmatpush3.bf16.msra.mxu0 %v9614_v1 }
 0x2b5   :  { %8857 = vmatprep.subr.bf16.mxu0 %v9686_v62 }
 0x2b6   :  { %8876 = vmatpush3.bf16.msra.mxu1 %v9627_v21 }
 0x2b7   :  { %8877 = vmatprep.subr.bf16.mxu1 %v9686_v62 }
 0x2b8   :  { %8858 = vmatpush3.bf16.msra.mxu0 %v9616_v2 }
 0x2b9   :  { %8859 = vmatprep.subr.bf16.mxu0 %v9686_v62 }
 0x2ba   :  { %v8532_v36 = vpop.f32.mrb[52].mxu0  ;;  %8878 = vmatpush3.bf16.msra.mxu1 %v9628_v22 }
 0x2bb   :  { %v8533_v37 = vpop.f32.mrb[53].mxu0  ;;  %8879 = vmatprep.subr.bf16.mxu1 %v9686_v62 }
 0x2bc   :  { %v8534_v39 = vadd.f32 %v8533_v37, %v8532_v36  ;;  %v8535_v40 = vpop.f32.mrb[54].mxu0  ;;  %v8554_v41 = vpop.f32.mrb[52].mxu1  ;;  %8860 = vmatpush3.bf16.msra.mxu0 %v9618_v5 }
 0x2bd   :  { %v8536_v42 = vpop.f32.mrb[55].mxu0  ;;  %v8555_v43 = vpop.f32.mrb[53].mxu1  ;;  %8861 = vmatprep.subr.bf16.mxu0 %v9686_v62 }
 0x2be   :  { %v6513_v44 = vadd.f32 %v8534_v39, %v6473_v27  ;;  %v8556_v45 = vadd.f32 %v8555_v43, %v8554_v41  ;;  %v8557_v46 = vpop.f32.mrb[54].mxu1  ;;  %8880 = vmatpush3.bf16.msra.mxu1 %v9629_v23  ;;  %v7136_v23 = vsub.s32 2, %v9774_v24 }
 0x2bf   :  { %v8558_v47 = vpop.f32.mrb[55].mxu1  ;;  %8881 = vmatprep.subr.bf16.mxu1 %v9686_v62 }
 0x2c0   :  { %v6553_v48 = vadd.f32 %v8556_v45, %v6513_v44  ;;  %8862 = vmatpush3.bf16.msra.mxu0 %v9620_v15 }
 0x2c1   :  { %8863 = vmatprep.subr.bf16.mxu0 %v9686_v62 }
 0x2c4   :  { %8864 = vmatpush3.bf16.msra.mxu0 %v9622_v17 }
 0x2da   :  { %v8576_v49 = vpop.f32.mrb[56].mxu0 }
 0x2db   :  { %v8577_v50 = vpop.f32.mrb[57].mxu0 }
 0x2dc   :  { %v8578_v51 = vadd.f32 %v8577_v50, %v8576_v49  ;;  %v8579_v52 = vpop.f32.mrb[58].mxu0  ;;  %v8598_v53 = vpop.f32.mrb[56].mxu1 }
 0x2dd   :  { %v8580_v54 = vpop.f32.mrb[59].mxu0  ;;  %v8599_v56 = vpop.f32.mrb[57].mxu1 }
 0x2de   :  { %v6593_v55 = vadd.f32 %v8578_v51, %v6553_v48  ;;  %v8600_v57 = vadd.f32 %v8599_v56, %v8598_v53  ;;  %v8601_v58 = vpop.f32.mrb[58].mxu1 }
 0x2df   :  { %v8602_v59 = vpop.f32.mrb[59].mxu1 }
 0x2e0   :  { %v6633_v60 = vadd.f32 %v8600_v57, %v6593_v55 }
 0x2fa   :  { %v8620_v3 = vpop.f32.mrb[60].mxu0 }
 0x2fb   :  { %v8621_v4 = vpop.f32.mrb[61].mxu0 }
 0x2fc   :  { %v8622_v6 = vadd.f32 %v8621_v4, %v8620_v3  ;;  %v8623_v7 = vpop.f32.mrb[62].mxu0  ;;  %v8642_v8 = vpop.f32.mrb[60].mxu1 }
 0x2fd   :  { %v8624_v9 = vpop.f32.mrb[63].mxu0  ;;  %v8643_v10 = vpop.f32.mrb[61].mxu1 }
 0x2fe   :  { %v6673_v11 = vadd.f32 %v8622_v6, %v6633_v60  ;;  %v8644_v12 = vadd.f32 %v8643_v10, %v8642_v8  ;;  %v8645_v13 = vpop.f32.mrb[62].mxu1 }
 0x2ff   :  { %v8646_v14 = vpop.f32.mrb[63].mxu1  ;;  %v9631_v13 = vld [vmem:[#allocation4 + $0xac] ss:$12 sps:$4 sm:$0xff]  }
 0x300   :  { %v6713_v16 = vadd.f32 %v8644_v12, %v6673_v11  ;;  %v9630_v12 = vld [vmem:[#allocation4 + $0x94] ss:$12 sps:$4 sm:$0xff]   ;;  %v7042_v14 = vsub.s32 1, %v9774_v24 }
 0x301   :  { %8882 = vmatpush3.bf16.msra.mxu1 %v9630_v12 }
 0x302   :  { %8883 = vmatprep.subr.bf16.mxu1 %v9686_v62  ;;  %v7043_v15 = vrot.slane %v9777_v38, %v7042_v14 }
 0x305   :  { %8884 = vmatpush3.bf16.msra.mxu1 %v9631_v13 }
 0x31a   :  { %v8664_v25 = vpop.f32.mrb[64].mxu0 }
 0x31b   :  { %v8665_v26 = vpop.f32.mrb[65].mxu0 }
 0x31c   :  { %v8666_v27 = vadd.f32 %v8665_v26, %v8664_v25  ;;  %v8667_v28 = vpop.f32.mrb[66].mxu0  ;;  %v8686_v29 = vpop.f32.mrb[64].mxu1  ;;  %v7137_v25 = vrot.slane %v9777_v38, %v7136_v23 }
 0x31d   :  { %v8668_v30 = vpop.f32.mrb[67].mxu0  ;;  %v8687_v31 = vpop.f32.mrb[65].mxu1 }
 0x31e   :  { %v6753_v32 = vadd.f32 %v8666_v27, %v6713_v16  ;;  %v8688_v33 = vadd.f32 %v8687_v31, %v8686_v29  ;;  %v8689_v34 = vpop.f32.mrb[66].mxu1 }
 0x31f   :  { %v8690_v35 = vpop.f32.mrb[67].mxu1 }
 0x320   :  { %v6793_v36 = vadd.f32 %v8688_v33, %v6753_v32 }
 0x33a   :  { %v8708_v37 = vpop.f32.mrb[68].mxu0 }
 0x33b   :  { %v8709_v39 = vpop.f32.mrb[69].mxu0 }
 0x33c   :  { %v8710_v40 = vadd.f32 %v8709_v39, %v8708_v37  ;;  %v8711_v41 = vpop.f32.mrb[70].mxu0  ;;  %v8730_v42 = vpop.f32.mrb[68].mxu1 }
 0x33d   :  { %v8712_v43 = vpop.f32.mrb[71].mxu0  ;;  %v8731_v45 = vpop.f32.mrb[69].mxu1 }
 0x33e   :  { %v6833_v44 = vadd.f32 %v8710_v40, %v6793_v36  ;;  %v8732_v46 = vadd.f32 %v8731_v45, %v8730_v42  ;;  %v8733_v47 = vpop.f32.mrb[70].mxu1 }
 0x33f   :  { %v8734_v48 = vpop.f32.mrb[71].mxu1 }
 0x340   :  { %v6873_v49 = vadd.f32 %v8732_v46, %v6833_v44 }
 0x35a   :  { %v8752_v50 = vpop.f32.mrb[72].mxu0 }
 0x35b   :  { %v8753_v51 = vpop.f32.mrb[73].mxu0 }
 0x35c   :  { %v8754_v52 = vadd.f32 %v8753_v51, %v8752_v50  ;;  %v8755_v53 = vpop.f32.mrb[74].mxu0  ;;  %v8774_v54 = vpop.f32.mrb[72].mxu1 }
 0x35d   :  { %v8756_v55 = vpop.f32.mrb[75].mxu0  ;;  %v8775_v56 = vpop.f32.mrb[73].mxu1 }
 0x35e   :  { %v6913_v57 = vadd.f32 %v8754_v52, %v6873_v49  ;;  %v8776_v58 = vadd.f32 %v8775_v56, %v8774_v54  ;;  %v8777_v59 = vpop.f32.mrb[74].mxu1 }
 0x35f   :  { %v8778_v60 = vpop.f32.mrb[75].mxu1 }
 0x360   :  { %v6953_v61 = vadd.f32 %v8776_v58, %v6913_v57 }
 0x37a   :  { %v8796_v63 = vpop.f32.mrb[76].mxu0 }
 0x37b   :  { %v8797_v0 = vpop.f32.mrb[77].mxu0 }
 0x37c   :  { %v8798_v1 = vadd.f32 %v8797_v0, %v8796_v63  ;;  %v8799_v2 = vpop.f32.mrb[78].mxu0  ;;  %v7032_v3 = vpop.f32.mrb[76].mxu1 }
 0x37d   :  { %v8800_v4 = vpop.f32.mrb[79].mxu0  ;;  %v8847_v5 = vpop.f32.mrb[77].mxu1 }
 0x37e   :  { %v6993_v6 = vadd.f32 %v8798_v1, %v6953_v61  ;;  %v7035_v7 = vpop.f32.mrb[78].mxu1 }
 0x37f   :  { %v8848_v8 = vpop.f32.mrb[79].mxu1 }
 0x380   :  { %v7033_v9 = vadd.f32 %v7032_v3, %v6993_v6 }
 0x382   :  { %v7038_v10 = vmax.f32 %v7033_v9, 0.0 }
 0x384   :  { %v7039_v11 = vpack.c.bf16 %v7038_v10, %v7038_v10 }
 0x386   :  { %8866 = vmatmul.mubr.bf16.vlgmr.msra.gmra.mrb[80].mxu0 %v7039_v11 }
 0x459   :  { %v7126_v16 = vpop.f32.mrb[80].mxu0 }
 0x45a   :  { %v7127_v17 = vadd.f32 %v7126_v16, %v7043_v15  ;;  %v8867_v18 = vpop.f32.mrb[81].mxu0 }
 0x45b   :  { %v7129_v19 = vpop.f32.mrb[82].mxu0 }
 0x45c   :  { %v7132_v20 = vmax.f32 %v7127_v17, 0.0  ;;  %v8868_v21 = vpop.f32.mrb[83].mxu0 }
 0x45e   :  { %v7133_v22 = vpack.c.bf16 %v7132_v20, %v7132_v20 }
 0x460   :  { %8886 = vmatmul.mubr.bf16.vlgmr.msra.gmra.mrb[80].mxu1 %v7133_v22 }
 0x533   :  { %v7204_v26 = vpop.f32.mrb[80].mxu1 }
 0x534   :  { %v7205_v62 = vadd.f32 %v7204_v26, %v7137_v25  ;;  %v8887_v27 = vpop.f32.mrb[81].mxu1 }
 0x535   :  { %v7207_v28 = vpop.f32.mrb[82].mxu1 }
 0x536   :  { %7210 = vst [vmem:[%s9934_s3] sm:$0xff] %v7205_v62  ;;  %v8888_v29 = vpop.f32.mrb[83].mxu1 }
 0x537   :  { %7215 = vsyncpa [#allocation3], 1 }
 0x538   :  { %7216 = vsyncpa [#allocation5], 1 }

</bundles_post_ra>
